<compile_context>
chip_gen: v7x
topology: tpu7x:2x2x1
jax: 0.10.0
libtpu: 0.0.40
codegen_flags: <defaults>
</compile_context>

<pallas_src>
import functools

import jax
import jax.numpy as jnp
from jax import lax
from jax.experimental import pallas as pl
from jax.experimental.pallas import tpu as pltpu


# ---------------------------------------------------------------------------
# Single fused kernel: all GAT layers + readout + MLP decoder
# ---------------------------------------------------------------------------
def _fused_forward_kernel(*refs, num_layers, heads, feat, g_num, n, e_dim):
    hf = heads * feat
    x_ref, adj_ref, ea_ref = refs[0], refs[1], refs[2]
    p = 3
    layer_refs = []
    for _ in range(num_layers):
        layer_refs.append(refs[p:p + 5])     # (w, adst_mat, asrc_mat, bias, v_edge[SMEM])
        p += 5
    w1_ref, b1_ref, w2_ref, b2_ref = refs[p:p + 4]
    p += 4
    enc_ref, dec_ref = refs[p], refs[p + 1]
    h_scr = refs[p + 2]                      # VMEM scratch [G*N, H*F]

    # Hoisted once: adjacency masks and edge-attribute tiles (reused by every layer).
    masks = [adj_ref[g, :, :] > 0.0 for g in range(g_num)]
    ea_tiles = [[ea_ref[g, e, :, :] for e in range(e_dim)] for g in range(g_num)]

    h = x_ref[...]                                                    # [G*N, C_in]

    for (w_ref, adst_ref, asrc_ref, b_ref, v_ref) in layer_refs:
        # Head-concatenated projection for all graphs at once.
        h_proj = jnp.dot(h, w_ref[...],
                         preferred_element_type=jnp.float32)          # [G*N, H*F]
        # Attention coefficient pieces for all heads at once (block-diagonal weights),
        # computed in both orientations so no in-kernel transpose is needed.
        a_dst_all = jnp.dot(h_proj, adst_ref[...],
                            preferred_element_type=jnp.float32)       # [G*N, H]
        a_src_all = lax.dot_general(asrc_ref[...], h_proj,
                                    (((1,), (1,)), ((), ())),
                                    preferred_element_type=jnp.float32)  # [H, G*N]

        for g in range(g_num):
            mask = masks[g]
            hp_g = h_proj[g * n:(g + 1) * n, :]                       # [N, H*F]
            for hd in range(heads):
                a_dst = a_dst_all[g * n:(g + 1) * n, hd:hd + 1]       # [N, 1]
                a_src = a_src_all[hd:hd + 1, g * n:(g + 1) * n]       # [1, N]
                # Edge-attention term: E scalar FMAs on [N, N] tiles (v lives in SMEM).
                a_edge = v_ref[0, hd] * ea_tiles[g][0]
                for e in range(1, e_dim):
                    a_edge = a_edge + v_ref[e, hd] * ea_tiles[g][e]

                logits = a_dst + a_src + a_edge                       # [N(i), N(j)]
                logits = jnp.maximum(logits, 0.2 * logits)            # LeakyReLU(0.2)
                logits = jnp.where(mask, logits, jnp.float32(-1e30))

                # Masked softmax over incoming neighbours j (lane reduce).
                row_max = jnp.max(logits, axis=-1, keepdims=True)
                pexp = jnp.where(mask, jnp.exp(logits - row_max), 0.0)
                denom = jnp.maximum(jnp.sum(pexp, axis=-1, keepdims=True),
                                    jnp.float32(1e-30))
                alpha = pexp * pl.reciprocal(denom, approx=True)      # [N, N]

                out_h = jnp.dot(alpha, hp_g[:, hd * feat:(hd + 1) * feat],
                                preferred_element_type=jnp.float32)   # [N, F]
                h_scr[g * n:(g + 1) * n, hd * feat:(hd + 1) * feat] = out_h

        h = h_scr[...] + b_ref[...]                                   # bias
        h = jnp.where(h > 0.0, h, jnp.exp(jnp.minimum(h, 0.0)) - 1.0)  # ELU

    # Readout: concat(global_mean_pool, global_max_pool) per graph.
    rows = []
    for g in range(g_num):
        hg = h[g * n:(g + 1) * n, :]
        g_mean = jnp.mean(hg, axis=0, keepdims=True)                  # [1, H*F]
        g_max = jnp.max(hg, axis=0, keepdims=True)                    # [1, H*F]
        rows.append(jnp.concatenate([g_mean, g_max], axis=-1))
    readout = jnp.concatenate(rows, axis=0)                           # [G, 2*H*F]

    # MLP decoder (dropout = identity in eval mode).
    h1 = jnp.dot(readout, w1_ref[...],
                 preferred_element_type=jnp.float32) + b1_ref[...]
    h1 = jnp.maximum(h1, 0.0)                                         # ReLU
    y = jnp.dot(h1, w2_ref[...],
                preferred_element_type=jnp.float32) + b2_ref[...]

    enc_ref[...] = readout.astype(enc_ref.dtype)
    dec_ref[...] = y.astype(dec_ref.dtype)


def _vmem_full_spec(shape):
    nd = len(shape)
    return pl.BlockSpec(shape, lambda i, _nd=nd: (0,) * _nd)


def homogeneous_gat_ed_mlp_forward(params, x, adj, edge_attr):
    g_num, n, c0 = x.shape
    e_dim = edge_attr.shape[-1]
    layers = params["gat_layers"]
    num_layers = len(layers)
    heads = params["heads"]
    feat = params["hidden_size"]
    hf = heads * feat
    mlp = params["mlp"]
    d_out = mlp["w2"].shape[1]

    # Glue (plain JAX): flatten node dim, put edge feature dim second for [N,N] tiles.
    x_flat = x.reshape(g_num * n, c0)
    ea = jnp.transpose(edge_attr, (0, 3, 1, 2))                       # [G, E, N, N]

    inputs = [x_flat, adj, ea]
    in_specs = [_vmem_full_spec(x_flat.shape),
                _vmem_full_spec(adj.shape),
                _vmem_full_spec(ea.shape)]
    for lp in layers:
        inputs += [lp["w"], lp["adst_mat"], lp["asrc_mat"], lp["bias"], lp["v_edge"]]
        in_specs += [_vmem_full_spec(lp["w"].shape),
                     _vmem_full_spec(lp["adst_mat"].shape),
                     _vmem_full_spec(lp["asrc_mat"].shape),
                     _vmem_full_spec(lp["bias"].shape),
                     pl.BlockSpec(memory_space=pltpu.MemorySpace.SMEM)]
    inputs += [mlp["w1"], mlp["b1"], mlp["w2"], mlp["b2"]]
    in_specs += [_vmem_full_spec(mlp["w1"].shape),
                 _vmem_full_spec(mlp["b1"].shape),
                 _vmem_full_spec(mlp["w2"].shape),
                 _vmem_full_spec(mlp["b2"].shape)]

    kernel = functools.partial(_fused_forward_kernel,
                               num_layers=num_layers, heads=heads, feat=feat,
                               g_num=g_num, n=n, e_dim=e_dim)

    enc, dec = pl.pallas_call(
        kernel,
        out_shape=(jax.ShapeDtypeStruct((g_num, 2 * hf), jnp.float32),
                   jax.ShapeDtypeStruct((g_num, d_out), jnp.float32)),
        grid=(1,),
        in_specs=in_specs,
        out_specs=(_vmem_full_spec((g_num, 2 * hf)),
                   _vmem_full_spec((g_num, d_out))),
        scratch_shapes=[pltpu.VMEM((g_num * n, hf), jnp.float32)],
        compiler_params=pltpu.CompilerParams(
            dimension_semantics=("arbitrary",)),
    )(*inputs)
    return enc, dec


# ---------------------------------------------------------------------------
# Parameter initialization (deterministic, synthetic)
# ---------------------------------------------------------------------------
def init_params(key, *, in_channels, edge_dim, hidden_size, heads, num_layers,
                mlp_hidden, output_size):
    params = {"gat_layers": [], "mlp": {}, "heads": heads, "hidden_size": hidden_size}
    cin = in_channels
    feat = hidden_size
    hf = heads * feat
    for _ in range(num_layers):
        key, k1, k2, k3, k4, k5 = jax.random.split(key, 6)
        w = jax.random.normal(k1, (heads, cin, feat), jnp.float32) / jnp.sqrt(cin)
        we = jax.random.normal(k2, (heads, edge_dim, feat), jnp.float32) / jnp.sqrt(edge_dim)
        att_src = jax.random.normal(k3, (heads, feat), jnp.float32) / jnp.sqrt(feat)
        att_dst = jax.random.normal(k4, (heads, feat), jnp.float32) / jnp.sqrt(feat)
        att_edge = jax.random.normal(k5, (heads, feat), jnp.float32) / jnp.sqrt(feat)

        # Head-concatenated projection [Cin, H*F]: h_proj[:, h*F:(h+1)*F] = x @ w[h].
        w_cat = jnp.transpose(w, (1, 0, 2)).reshape(cin, hf)
        # Block-diagonal attention matrices: one matmul covers all heads.
        adst_mat = jnp.zeros((hf, heads), jnp.float32)
        asrc_mat = jnp.zeros((heads, hf), jnp.float32)
        for h in range(heads):
            adst_mat = adst_mat.at[h * feat:(h + 1) * feat, h].set(att_dst[h])
            asrc_mat = asrc_mat.at[h, h * feat:(h + 1) * feat].set(att_src[h])
        # Fold the (linear) edge projection and the edge attention vector into
        # v[e, h] = sum_f W_edge[h, e, f] * att_edge[h, f]; then
        # a_edge_h[i, j] = edge_attr[i, j, :] . v[:, h]  (no Kronecker expansion).
        v_edge = jnp.einsum('hef,hf->eh', we, att_edge)               # [E, H]

        params["gat_layers"].append({
            "w": w_cat,
            "adst_mat": adst_mat,
            "asrc_mat": asrc_mat,
            "bias": jnp.zeros((1, hf), jnp.float32),
            "v_edge": v_edge,
        })
        cin = hf

    key, km1, km2 = jax.random.split(key, 3)
    d_in = 2 * hf
    params["mlp"] = {
        "w1": jax.random.normal(km1, (d_in, mlp_hidden), jnp.float32) / jnp.sqrt(d_in),
        "b1": jnp.zeros((1, mlp_hidden), jnp.float32),
        "w2": jax.random.normal(km2, (mlp_hidden, output_size), jnp.float32) / jnp.sqrt(mlp_hidden),
        "b2": jnp.zeros((1, output_size), jnp.float32),
    }
    return params


if __name__ == "__main__":
    enc_hp = dict(in_channels=8, edge_dim=4, hidden_size=16, heads=2,
                  dropout=0.0, pooling_ratio=0.5, num_layers=2)
    dec_hp = dict(output_size=3, nodes_per_hidden_layer=32, dropout=0.0)

    G, N = 2, 16
    key = jax.random.PRNGKey(0)
    key, kx, ka, ke, kp = jax.random.split(key, 5)

    x = jax.random.normal(kx, (G, N, enc_hp["in_channels"]), jnp.float32)
    # random sparse adjacency + self loops (GATConv default add_self_loops=True)
    adj = (jax.random.uniform(ka, (G, N, N)) < 0.3).astype(jnp.float32)
    adj = jnp.maximum(adj, jnp.eye(N, dtype=jnp.float32)[None])
    edge_attr = jax.random.normal(ke, (G, N, N, enc_hp["edge_dim"]), jnp.float32)

    params = init_params(
        kp,
        in_channels=enc_hp["in_channels"],
        edge_dim=enc_hp["edge_dim"],
        hidden_size=enc_hp["hidden_size"],
        heads=enc_hp["heads"],
        num_layers=enc_hp["num_layers"],
        mlp_hidden=dec_hp["nodes_per_hidden_layer"],
        output_size=dec_hp["output_size"],
    )

    fwd = jax.jit(functools.partial(homogeneous_gat_ed_mlp_forward, params))
    enc_out, dec_out = fwd(x, adj, edge_attr)
    jax.block_until_ready((enc_out, dec_out))

    assert enc_out.shape == (G, 2 * enc_hp["heads"] * enc_hp["hidden_size"])
    assert dec_out.shape == (G, dec_hp["output_size"])
    assert bool(jnp.all(jnp.isfinite(enc_out))) and bool(jnp.all(jnp.isfinite(dec_out)))
    print("KERNEL_OK")
</pallas_src>

<mosaic_0001>
module attributes {stable_mosaic.version = 11 : i64} {
  func.func @_fused_forward_kernel(%arg0: i32, %arg1: memref<32x8xf32, #tpu.memory_space<vmem>>, %arg2: memref<2x16x16xf32, #tpu.memory_space<vmem>>, %arg3: memref<2x4x16x16xf32, #tpu.memory_space<vmem>>, %arg4: memref<8x32xf32, #tpu.memory_space<vmem>>, %arg5: memref<32x2xf32, #tpu.memory_space<vmem>>, %arg6: memref<2x32xf32, #tpu.memory_space<vmem>>, %arg7: memref<1x32xf32, #tpu.memory_space<vmem>>, %arg8: memref<4x2xf32, #tpu.memory_space<smem>>, %arg9: memref<32x32xf32, #tpu.memory_space<vmem>>, %arg10: memref<32x2xf32, #tpu.memory_space<vmem>>, %arg11: memref<2x32xf32, #tpu.memory_space<vmem>>, %arg12: memref<1x32xf32, #tpu.memory_space<vmem>>, %arg13: memref<4x2xf32, #tpu.memory_space<smem>>, %arg14: memref<64x32xf32, #tpu.memory_space<vmem>>, %arg15: memref<1x32xf32, #tpu.memory_space<vmem>>, %arg16: memref<32x3xf32, #tpu.memory_space<vmem>>, %arg17: memref<1x3xf32, #tpu.memory_space<vmem>>, %arg18: memref<2x64xf32, #tpu.memory_space<vmem>>, %arg19: memref<2x3xf32, #tpu.memory_space<vmem>>, %arg20: memref<32x32xf32, #tpu.memory_space<vmem>>) attributes {dimension_semantics = [#tpu.dimension_semantics<arbitrary>], iteration_bounds = array<i64: 1>, scalar_prefetch = 0 : i64, scratch_operands = 1 : i64, tpu.core_type = #tpu.core_type<tc>, window_params = [{pipeline_mode = #tpu.pipeline_mode<synchronous>, transform_indices = @transform_0, window_bounds = array<i64: 32, 8>}, {pipeline_mode = #tpu.pipeline_mode<synchronous>, transform_indices = @transform_1, window_bounds = array<i64: 2, 16, 16>}, {pipeline_mode = #tpu.pipeline_mode<synchronous>, transform_indices = @transform_2, window_bounds = array<i64: 2, 4, 16, 16>}, {pipeline_mode = #tpu.pipeline_mode<synchronous>, transform_indices = @transform_3, window_bounds = array<i64: 8, 32>}, {pipeline_mode = #tpu.pipeline_mode<synchronous>, transform_indices = @transform_4, window_bounds = array<i64: 32, 2>}, {pipeline_mode = #tpu.pipeline_mode<synchronous>, transform_indices = @transform_5, window_bounds = array<i64: 2, 32>}, {pipeline_mode = #tpu.pipeline_mode<synchronous>, transform_indices = @transform_6, window_bounds = array<i64: 1, 32>}, {transform_indices = @transform_7, window_bounds = array<i64: 4, 2>}, {pipeline_mode = #tpu.pipeline_mode<synchronous>, transform_indices = @transform_8, window_bounds = array<i64: 32, 32>}, {pipeline_mode = #tpu.pipeline_mode<synchronous>, transform_indices = @transform_9, window_bounds = array<i64: 32, 2>}, {pipeline_mode = #tpu.pipeline_mode<synchronous>, transform_indices = @transform_10, window_bounds = array<i64: 2, 32>}, {pipeline_mode = #tpu.pipeline_mode<synchronous>, transform_indices = @transform_11, window_bounds = array<i64: 1, 32>}, {transform_indices = @transform_12, window_bounds = array<i64: 4, 2>}, {pipeline_mode = #tpu.pipeline_mode<synchronous>, transform_indices = @transform_13, window_bounds = array<i64: 64, 32>}, {pipeline_mode = #tpu.pipeline_mode<synchronous>, transform_indices = @transform_14, window_bounds = array<i64: 1, 32>}, {pipeline_mode = #tpu.pipeline_mode<synchronous>, transform_indices = @transform_15, window_bounds = array<i64: 32, 3>}, {pipeline_mode = #tpu.pipeline_mode<synchronous>, transform_indices = @transform_16, window_bounds = array<i64: 1, 3>}, {pipeline_mode = #tpu.pipeline_mode<synchronous>, transform_indices = @transform_17, window_bounds = array<i64: 2, 64>}, {pipeline_mode = #tpu.pipeline_mode<synchronous>, transform_indices = @transform_18, window_bounds = array<i64: 2, 3>}]} {
    %c0 = arith.constant 0 : index
    %c0_0 = arith.constant 0 : index
    %c0_1 = arith.constant 0 : index
    %0 = vector.load %arg2[%c0, %c0_0, %c0_1] : memref<2x16x16xf32, #tpu.memory_space<vmem>>, vector<1x16x16xf32>
    %1 = vector.shape_cast %0 : vector<1x16x16xf32> to vector<16x16xf32>
    %cst = arith.constant 0.000000e+00 : f32
    %2 = vector.broadcast %cst : f32 to vector<16x16xf32>
    %3 = arith.cmpf ogt, %1, %2 : vector<16x16xf32>
    %c1 = arith.constant 1 : index
    %c0_2 = arith.constant 0 : index
    %c0_3 = arith.constant 0 : index
    %4 = vector.load %arg2[%c1, %c0_2, %c0_3] : memref<2x16x16xf32, #tpu.memory_space<vmem>>, vector<1x16x16xf32>
    %5 = vector.shape_cast %4 : vector<1x16x16xf32> to vector<16x16xf32>
    %cst_4 = arith.constant 0.000000e+00 : f32
    %6 = vector.broadcast %cst_4 : f32 to vector<16x16xf32>
    %7 = arith.cmpf ogt, %5, %6 : vector<16x16xf32>
    %c0_5 = arith.constant 0 : index
    %c0_6 = arith.constant 0 : index
    %c0_7 = arith.constant 0 : index
    %c0_8 = arith.constant 0 : index
    %8 = vector.load %arg3[%c0_5, %c0_6, %c0_7, %c0_8] : memref<2x4x16x16xf32, #tpu.memory_space<vmem>>, vector<1x1x16x16xf32>
    %9 = vector.shape_cast %8 : vector<1x1x16x16xf32> to vector<16x16xf32>
    %c0_9 = arith.constant 0 : index
    %c1_10 = arith.constant 1 : index
    %c0_11 = arith.constant 0 : index
    %c0_12 = arith.constant 0 : index
    %10 = vector.load %arg3[%c0_9, %c1_10, %c0_11, %c0_12] : memref<2x4x16x16xf32, #tpu.memory_space<vmem>>, vector<1x1x16x16xf32>
    %11 = vector.shape_cast %10 : vector<1x1x16x16xf32> to vector<16x16xf32>
    %c0_13 = arith.constant 0 : index
    %c2 = arith.constant 2 : index
    %c0_14 = arith.constant 0 : index
    %c0_15 = arith.constant 0 : index
    %12 = vector.load %arg3[%c0_13, %c2, %c0_14, %c0_15] : memref<2x4x16x16xf32, #tpu.memory_space<vmem>>, vector<1x1x16x16xf32>
    %13 = vector.shape_cast %12 : vector<1x1x16x16xf32> to vector<16x16xf32>
    %c0_16 = arith.constant 0 : index
    %c3 = arith.constant 3 : index
    %c0_17 = arith.constant 0 : index
    %c0_18 = arith.constant 0 : index
    %14 = vector.load %arg3[%c0_16, %c3, %c0_17, %c0_18] : memref<2x4x16x16xf32, #tpu.memory_space<vmem>>, vector<1x1x16x16xf32>
    %15 = vector.shape_cast %14 : vector<1x1x16x16xf32> to vector<16x16xf32>
    %c1_19 = arith.constant 1 : index
    %c0_20 = arith.constant 0 : index
    %c0_21 = arith.constant 0 : index
    %c0_22 = arith.constant 0 : index
    %16 = vector.load %arg3[%c1_19, %c0_20, %c0_21, %c0_22] : memref<2x4x16x16xf32, #tpu.memory_space<vmem>>, vector<1x1x16x16xf32>
    %17 = vector.shape_cast %16 : vector<1x1x16x16xf32> to vector<16x16xf32>
    %c1_23 = arith.constant 1 : index
    %c1_24 = arith.constant 1 : index
    %c0_25 = arith.constant 0 : index
    %c0_26 = arith.constant 0 : index
    %18 = vector.load %arg3[%c1_23, %c1_24, %c0_25, %c0_26] : memref<2x4x16x16xf32, #tpu.memory_space<vmem>>, vector<1x1x16x16xf32>
    %19 = vector.shape_cast %18 : vector<1x1x16x16xf32> to vector<16x16xf32>
    %c1_27 = arith.constant 1 : index
    %c2_28 = arith.constant 2 : index
    %c0_29 = arith.constant 0 : index
    %c0_30 = arith.constant 0 : index
    %20 = vector.load %arg3[%c1_27, %c2_28, %c0_29, %c0_30] : memref<2x4x16x16xf32, #tpu.memory_space<vmem>>, vector<1x1x16x16xf32>
    %21 = vector.shape_cast %20 : vector<1x1x16x16xf32> to vector<16x16xf32>
    %c1_31 = arith.constant 1 : index
    %c3_32 = arith.constant 3 : index
    %c0_33 = arith.constant 0 : index
    %c0_34 = arith.constant 0 : index
    %22 = vector.load %arg3[%c1_31, %c3_32, %c0_33, %c0_34] : memref<2x4x16x16xf32, #tpu.memory_space<vmem>>, vector<1x1x16x16xf32>
    %23 = vector.shape_cast %22 : vector<1x1x16x16xf32> to vector<16x16xf32>
    %c0_35 = arith.constant 0 : index
    %c0_36 = arith.constant 0 : index
    %24 = vector.load %arg1[%c0_35, %c0_36] : memref<32x8xf32, #tpu.memory_space<vmem>>, vector<32x8xf32>
    %c0_37 = arith.constant 0 : index
    %c0_38 = arith.constant 0 : index
    %25 = vector.load %arg4[%c0_37, %c0_38] : memref<8x32xf32, #tpu.memory_space<vmem>>, vector<8x32xf32>
    %cst_39 = arith.constant dense<0.000000e+00> : vector<32x32xf32>
    %26 = tpu.matmul %24, %25, %cst_39 {dimension_numbers = #tpu.dot_dimension_numbers<[1], [0], [0], [1], [0, 0, 1, 1], [], []>} : vector<32x8xf32>, vector<8x32xf32>, vector<32x32xf32> -> vector<32x32xf32>
    %c0_40 = arith.constant 0 : index
    %c0_41 = arith.constant 0 : index
    %27 = vector.load %arg5[%c0_40, %c0_41] : memref<32x2xf32, #tpu.memory_space<vmem>>, vector<32x2xf32>
    %cst_42 = arith.constant dense<0.000000e+00> : vector<32x2xf32>
    %28 = tpu.matmul %26, %27, %cst_42 {dimension_numbers = #tpu.dot_dimension_numbers<[1], [0], [0], [1], [0, 0, 1, 1], [], []>} : vector<32x32xf32>, vector<32x2xf32>, vector<32x2xf32> -> vector<32x2xf32>
    %c0_43 = arith.constant 0 : index
    %c0_44 = arith.constant 0 : index
    %29 = vector.load %arg6[%c0_43, %c0_44] : memref<2x32xf32, #tpu.memory_space<vmem>>, vector<2x32xf32>
    %cst_45 = arith.constant dense<0.000000e+00> : vector<2x32xf32>
    %30 = tpu.matmul %29, %26, %cst_45 {dimension_numbers = #tpu.dot_dimension_numbers<[1], [1], [0], [0], [0, 0, 1, 0], [], []>} : vector<2x32xf32>, vector<32x32xf32>, vector<2x32xf32> -> vector<2x32xf32>
    %31 = vector.extract_strided_slice %26 {offsets = [0, 0], sizes = [16, 32], strides = [1, 1]} : vector<32x32xf32> to vector<16x32xf32>
    %32 = vector.extract_strided_slice %28 {offsets = [0, 0], sizes = [16, 1], strides = [1, 1]} : vector<32x2xf32> to vector<16x1xf32>
    %33 = vector.extract_strided_slice %30 {offsets = [0, 0], sizes = [1, 16], strides = [1, 1]} : vector<2x32xf32> to vector<1x16xf32>
    %c0_46 = arith.constant 0 : index
    %c0_47 = arith.constant 0 : index
    %34 = memref.load %arg8[%c0_46, %c0_47] : memref<4x2xf32, #tpu.memory_space<smem>>
    %35 = vector.broadcast %34 : f32 to vector<16x16xf32>
    %36 = arith.mulf %35, %9 : vector<16x16xf32>
    %c1_48 = arith.constant 1 : index
    %c0_49 = arith.constant 0 : index
    %37 = memref.load %arg8[%c1_48, %c0_49] : memref<4x2xf32, #tpu.memory_space<smem>>
    %38 = vector.broadcast %37 : f32 to vector<16x16xf32>
    %39 = arith.mulf %38, %11 : vector<16x16xf32>
    %40 = arith.addf %36, %39 : vector<16x16xf32>
    %c2_50 = arith.constant 2 : index
    %c0_51 = arith.constant 0 : index
    %41 = memref.load %arg8[%c2_50, %c0_51] : memref<4x2xf32, #tpu.memory_space<smem>>
    %42 = vector.broadcast %41 : f32 to vector<16x16xf32>
    %43 = arith.mulf %42, %13 : vector<16x16xf32>
    %44 = arith.addf %40, %43 : vector<16x16xf32>
    %c3_52 = arith.constant 3 : index
    %c0_53 = arith.constant 0 : index
    %45 = memref.load %arg8[%c3_52, %c0_53] : memref<4x2xf32, #tpu.memory_space<smem>>
    %46 = vector.broadcast %45 : f32 to vector<16x16xf32>
    %47 = arith.mulf %46, %15 : vector<16x16xf32>
    %48 = arith.addf %44, %47 : vector<16x16xf32>
    %49 = vector.broadcast %32 : vector<16x1xf32> to vector<16x16xf32>
    %50 = vector.broadcast %33 : vector<1x16xf32> to vector<16x16xf32>
    %51 = arith.addf %49, %50 : vector<16x16xf32>
    %52 = arith.addf %51, %48 : vector<16x16xf32>
    %cst_54 = arith.constant 2.000000e-01 : f32
    %53 = vector.broadcast %cst_54 : f32 to vector<16x16xf32>
    %54 = arith.mulf %53, %52 : vector<16x16xf32>
    %55 = arith.maximumf %52, %54 : vector<16x16xf32>
    %cst_55 = arith.constant -1.000000e+30 : f32
    %56 = vector.broadcast %cst_55 : f32 to vector<16x16xf32>
    %57 = arith.select %3, %55, %56 : vector<16x16xi1>, vector<16x16xf32>
    %cst_56 = arith.constant dense<0xFF800000> : vector<16xf32>
    %58 = vector.multi_reduction <maximumf>, %57, %cst_56 [1] : vector<16x16xf32> to vector<16xf32>
    %59 = vector.shape_cast %58 : vector<16xf32> to vector<16x1xf32>
    %60 = vector.broadcast %59 : vector<16x1xf32> to vector<16x16xf32>
    %61 = arith.subf %57, %60 : vector<16x16xf32>
    %62 = math.exp %61 : vector<16x16xf32>
    %cst_57 = arith.constant 0.000000e+00 : f32
    %63 = vector.broadcast %cst_57 : f32 to vector<16x16xf32>
    %64 = arith.select %3, %62, %63 : vector<16x16xi1>, vector<16x16xf32>
    %cst_58 = arith.constant dense<0.000000e+00> : vector<16xf32>
    %65 = vector.multi_reduction <add>, %64, %cst_58 [1] : vector<16x16xf32> to vector<16xf32>
    %66 = vector.shape_cast %65 : vector<16xf32> to vector<16x1xf32>
    %cst_59 = arith.constant 1.000000e-30 : f32
    %67 = vector.broadcast %cst_59 : f32 to vector<16x1xf32>
    %68 = arith.maximumf %66, %67 : vector<16x1xf32>
    %69 = tpu.reciprocal %68 {approx = true} : vector<16x1xf32> -> vector<16x1xf32>
    %70 = vector.broadcast %69 : vector<16x1xf32> to vector<16x16xf32>
    %71 = arith.mulf %64, %70 : vector<16x16xf32>
    %72 = vector.extract_strided_slice %31 {offsets = [0, 0], sizes = [16, 16], strides = [1, 1]} : vector<16x32xf32> to vector<16x16xf32>
    %cst_60 = arith.constant dense<0.000000e+00> : vector<16x16xf32>
    %73 = tpu.matmul %71, %72, %cst_60 {dimension_numbers = #tpu.dot_dimension_numbers<[1], [0], [0], [1], [0, 0, 1, 1], [], []>} : vector<16x16xf32>, vector<16x16xf32>, vector<16x16xf32> -> vector<16x16xf32>
    %c0_61 = arith.constant 0 : index
    %c0_62 = arith.constant 0 : index
    %74 = vector.load %arg20[%c0_61, %c0_62] : memref<32x32xf32, #tpu.memory_space<vmem>>, vector<16x16xf32>
    tpu.vector_store %arg20[%c0_61, %c0_62], %73 {strides = array<i32>} : memref<32x32xf32, #tpu.memory_space<vmem>>, vector<16x16xf32>,
    %75 = vector.extract_strided_slice %28 {offsets = [0, 1], sizes = [16, 1], strides = [1, 1]} : vector<32x2xf32> to vector<16x1xf32>
    %76 = vector.extract_strided_slice %30 {offsets = [1, 0], sizes = [1, 16], strides = [1, 1]} : vector<2x32xf32> to vector<1x16xf32>
    %c0_63 = arith.constant 0 : index
    %c1_64 = arith.constant 1 : index
    %77 = memref.load %arg8[%c0_63, %c1_64] : memref<4x2xf32, #tpu.memory_space<smem>>
    %78 = vector.broadcast %77 : f32 to vector<16x16xf32>
    %79 = arith.mulf %78, %9 : vector<16x16xf32>
    %c1_65 = arith.constant 1 : index
    %c1_66 = arith.constant 1 : index
    %80 = memref.load %arg8[%c1_65, %c1_66] : memref<4x2xf32, #tpu.memory_space<smem>>
    %81 = vector.broadcast %80 : f32 to vector<16x16xf32>
    %82 = arith.mulf %81, %11 : vector<16x16xf32>
    %83 = arith.addf %79, %82 : vector<16x16xf32>
    %c2_67 = arith.constant 2 : index
    %c1_68 = arith.constant 1 : index
    %84 = memref.load %arg8[%c2_67, %c1_68] : memref<4x2xf32, #tpu.memory_space<smem>>
    %85 = vector.broadcast %84 : f32 to vector<16x16xf32>
    %86 = arith.mulf %85, %13 : vector<16x16xf32>
    %87 = arith.addf %83, %86 : vector<16x16xf32>
    %c3_69 = arith.constant 3 : index
    %c1_70 = arith.constant 1 : index
    %88 = memref.load %arg8[%c3_69, %c1_70] : memref<4x2xf32, #tpu.memory_space<smem>>
    %89 = vector.broadcast %88 : f32 to vector<16x16xf32>
    %90 = arith.mulf %89, %15 : vector<16x16xf32>
    %91 = arith.addf %87, %90 : vector<16x16xf32>
    %92 = vector.broadcast %75 : vector<16x1xf32> to vector<16x16xf32>
    %93 = vector.broadcast %76 : vector<1x16xf32> to vector<16x16xf32>
    %94 = arith.addf %92, %93 : vector<16x16xf32>
    %95 = arith.addf %94, %91 : vector<16x16xf32>
    %cst_71 = arith.constant 2.000000e-01 : f32
    %96 = vector.broadcast %cst_71 : f32 to vector<16x16xf32>
    %97 = arith.mulf %96, %95 : vector<16x16xf32>
    %98 = arith.maximumf %95, %97 : vector<16x16xf32>
    %cst_72 = arith.constant -1.000000e+30 : f32
    %99 = vector.broadcast %cst_72 : f32 to vector<16x16xf32>
    %100 = arith.select %3, %98, %99 : vector<16x16xi1>, vector<16x16xf32>
    %cst_73 = arith.constant dense<0xFF800000> : vector<16xf32>
    %101 = vector.multi_reduction <maximumf>, %100, %cst_73 [1] : vector<16x16xf32> to vector<16xf32>
    %102 = vector.shape_cast %101 : vector<16xf32> to vector<16x1xf32>
    %103 = vector.broadcast %102 : vector<16x1xf32> to vector<16x16xf32>
    %104 = arith.subf %100, %103 : vector<16x16xf32>
    %105 = math.exp %104 : vector<16x16xf32>
    %cst_74 = arith.constant 0.000000e+00 : f32
    %106 = vector.broadcast %cst_74 : f32 to vector<16x16xf32>
    %107 = arith.select %3, %105, %106 : vector<16x16xi1>, vector<16x16xf32>
    %cst_75 = arith.constant dense<0.000000e+00> : vector<16xf32>
    %108 = vector.multi_reduction <add>, %107, %cst_75 [1] : vector<16x16xf32> to vector<16xf32>
    %109 = vector.shape_cast %108 : vector<16xf32> to vector<16x1xf32>
    %cst_76 = arith.constant 1.000000e-30 : f32
    %110 = vector.broadcast %cst_76 : f32 to vector<16x1xf32>
    %111 = arith.maximumf %109, %110 : vector<16x1xf32>
    %112 = tpu.reciprocal %111 {approx = true} : vector<16x1xf32> -> vector<16x1xf32>
    %113 = vector.broadcast %112 : vector<16x1xf32> to vector<16x16xf32>
    %114 = arith.mulf %107, %113 : vector<16x16xf32>
    %115 = vector.extract_strided_slice %31 {offsets = [0, 16], sizes = [16, 16], strides = [1, 1]} : vector<16x32xf32> to vector<16x16xf32>
    %cst_77 = arith.constant dense<0.000000e+00> : vector<16x16xf32>
    %116 = tpu.matmul %114, %115, %cst_77 {dimension_numbers = #tpu.dot_dimension_numbers<[1], [0], [0], [1], [0, 0, 1, 1], [], []>} : vector<16x16xf32>, vector<16x16xf32>, vector<16x16xf32> -> vector<16x16xf32>
    %c0_78 = arith.constant 0 : index
    %c16 = arith.constant 16 : index
    %117 = vector.load %arg20[%c0_78, %c16] : memref<32x32xf32, #tpu.memory_space<vmem>>, vector<16x16xf32>
    tpu.vector_store %arg20[%c0_78, %c16], %116 {strides = array<i32>} : memref<32x32xf32, #tpu.memory_space<vmem>>, vector<16x16xf32>,
    %118 = vector.extract_strided_slice %26 {offsets = [16, 0], sizes = [16, 32], strides = [1, 1]} : vector<32x32xf32> to vector<16x32xf32>
    %119 = vector.extract_strided_slice %28 {offsets = [16, 0], sizes = [16, 1], strides = [1, 1]} : vector<32x2xf32> to vector<16x1xf32>
    %120 = vector.extract_strided_slice %30 {offsets = [0, 16], sizes = [1, 16], strides = [1, 1]} : vector<2x32xf32> to vector<1x16xf32>
    %c0_79 = arith.constant 0 : index
    %c0_80 = arith.constant 0 : index
    %121 = memref.load %arg8[%c0_79, %c0_80] : memref<4x2xf32, #tpu.memory_space<smem>>
    %122 = vector.broadcast %121 : f32 to vector<16x16xf32>
    %123 = arith.mulf %122, %17 : vector<16x16xf32>
    %c1_81 = arith.constant 1 : index
    %c0_82 = arith.constant 0 : index
    %124 = memref.load %arg8[%c1_81, %c0_82] : memref<4x2xf32, #tpu.memory_space<smem>>
    %125 = vector.broadcast %124 : f32 to vector<16x16xf32>
    %126 = arith.mulf %125, %19 : vector<16x16xf32>
    %127 = arith.addf %123, %126 : vector<16x16xf32>
    %c2_83 = arith.constant 2 : index
    %c0_84 = arith.constant 0 : index
    %128 = memref.load %arg8[%c2_83, %c0_84] : memref<4x2xf32, #tpu.memory_space<smem>>
    %129 = vector.broadcast %128 : f32 to vector<16x16xf32>
    %130 = arith.mulf %129, %21 : vector<16x16xf32>
    %131 = arith.addf %127, %130 : vector<16x16xf32>
    %c3_85 = arith.constant 3 : index
    %c0_86 = arith.constant 0 : index
    %132 = memref.load %arg8[%c3_85, %c0_86] : memref<4x2xf32, #tpu.memory_space<smem>>
    %133 = vector.broadcast %132 : f32 to vector<16x16xf32>
    %134 = arith.mulf %133, %23 : vector<16x16xf32>
    %135 = arith.addf %131, %134 : vector<16x16xf32>
    %136 = vector.broadcast %119 : vector<16x1xf32> to vector<16x16xf32>
    %137 = vector.broadcast %120 : vector<1x16xf32> to vector<16x16xf32>
    %138 = arith.addf %136, %137 : vector<16x16xf32>
    %139 = arith.addf %138, %135 : vector<16x16xf32>
    %cst_87 = arith.constant 2.000000e-01 : f32
    %140 = vector.broadcast %cst_87 : f32 to vector<16x16xf32>
    %141 = arith.mulf %140, %139 : vector<16x16xf32>
    %142 = arith.maximumf %139, %141 : vector<16x16xf32>
    %cst_88 = arith.constant -1.000000e+30 : f32
    %143 = vector.broadcast %cst_88 : f32 to vector<16x16xf32>
    %144 = arith.select %7, %142, %143 : vector<16x16xi1>, vector<16x16xf32>
    %cst_89 = arith.constant dense<0xFF800000> : vector<16xf32>
    %145 = vector.multi_reduction <maximumf>, %144, %cst_89 [1] : vector<16x16xf32> to vector<16xf32>
    %146 = vector.shape_cast %145 : vector<16xf32> to vector<16x1xf32>
    %147 = vector.broadcast %146 : vector<16x1xf32> to vector<16x16xf32>
    %148 = arith.subf %144, %147 : vector<16x16xf32>
    %149 = math.exp %148 : vector<16x16xf32>
    %cst_90 = arith.constant 0.000000e+00 : f32
    %150 = vector.broadcast %cst_90 : f32 to vector<16x16xf32>
    %151 = arith.select %7, %149, %150 : vector<16x16xi1>, vector<16x16xf32>
    %cst_91 = arith.constant dense<0.000000e+00> : vector<16xf32>
    %152 = vector.multi_reduction <add>, %151, %cst_91 [1] : vector<16x16xf32> to vector<16xf32>
    %153 = vector.shape_cast %152 : vector<16xf32> to vector<16x1xf32>
    %cst_92 = arith.constant 1.000000e-30 : f32
    %154 = vector.broadcast %cst_92 : f32 to vector<16x1xf32>
    %155 = arith.maximumf %153, %154 : vector<16x1xf32>
    %156 = tpu.reciprocal %155 {approx = true} : vector<16x1xf32> -> vector<16x1xf32>
    %157 = vector.broadcast %156 : vector<16x1xf32> to vector<16x16xf32>
    %158 = arith.mulf %151, %157 : vector<16x16xf32>
    %159 = vector.extract_strided_slice %118 {offsets = [0, 0], sizes = [16, 16], strides = [1, 1]} : vector<16x32xf32> to vector<16x16xf32>
    %cst_93 = arith.constant dense<0.000000e+00> : vector<16x16xf32>
    %160 = tpu.matmul %158, %159, %cst_93 {dimension_numbers = #tpu.dot_dimension_numbers<[1], [0], [0], [1], [0, 0, 1, 1], [], []>} : vector<16x16xf32>, vector<16x16xf32>, vector<16x16xf32> -> vector<16x16xf32>
    %c16_94 = arith.constant 16 : index
    %c0_95 = arith.constant 0 : index
    %161 = vector.load %arg20[%c16_94, %c0_95] : memref<32x32xf32, #tpu.memory_space<vmem>>, vector<16x16xf32>
    tpu.vector_store %arg20[%c16_94, %c0_95], %160 {strides = array<i32>} : memref<32x32xf32, #tpu.memory_space<vmem>>, vector<16x16xf32>,
    %162 = vector.extract_strided_slice %28 {offsets = [16, 1], sizes = [16, 1], strides = [1, 1]} : vector<32x2xf32> to vector<16x1xf32>
    %163 = vector.extract_strided_slice %30 {offsets = [1, 16], sizes = [1, 16], strides = [1, 1]} : vector<2x32xf32> to vector<1x16xf32>
    %c0_96 = arith.constant 0 : index
    %c1_97 = arith.constant 1 : index
    %164 = memref.load %arg8[%c0_96, %c1_97] : memref<4x2xf32, #tpu.memory_space<smem>>
    %165 = vector.broadcast %164 : f32 to vector<16x16xf32>
    %166 = arith.mulf %165, %17 : vector<16x16xf32>
    %c1_98 = arith.constant 1 : index
    %c1_99 = arith.constant 1 : index
    %167 = memref.load %arg8[%c1_98, %c1_99] : memref<4x2xf32, #tpu.memory_space<smem>>
    %168 = vector.broadcast %167 : f32 to vector<16x16xf32>
    %169 = arith.mulf %168, %19 : vector<16x16xf32>
    %170 = arith.addf %166, %169 : vector<16x16xf32>
    %c2_100 = arith.constant 2 : index
    %c1_101 = arith.constant 1 : index
    %171 = memref.load %arg8[%c2_100, %c1_101] : memref<4x2xf32, #tpu.memory_space<smem>>
    %172 = vector.broadcast %171 : f32 to vector<16x16xf32>
    %173 = arith.mulf %172, %21 : vector<16x16xf32>
    %174 = arith.addf %170, %173 : vector<16x16xf32>
    %c3_102 = arith.constant 3 : index
    %c1_103 = arith.constant 1 : index
    %175 = memref.load %arg8[%c3_102, %c1_103] : memref<4x2xf32, #tpu.memory_space<smem>>
    %176 = vector.broadcast %175 : f32 to vector<16x16xf32>
    %177 = arith.mulf %176, %23 : vector<16x16xf32>
    %178 = arith.addf %174, %177 : vector<16x16xf32>
    %179 = vector.broadcast %162 : vector<16x1xf32> to vector<16x16xf32>
    %180 = vector.broadcast %163 : vector<1x16xf32> to vector<16x16xf32>
    %181 = arith.addf %179, %180 : vector<16x16xf32>
    %182 = arith.addf %181, %178 : vector<16x16xf32>
    %cst_104 = arith.constant 2.000000e-01 : f32
    %183 = vector.broadcast %cst_104 : f32 to vector<16x16xf32>
    %184 = arith.mulf %183, %182 : vector<16x16xf32>
    %185 = arith.maximumf %182, %184 : vector<16x16xf32>
    %cst_105 = arith.constant -1.000000e+30 : f32
    %186 = vector.broadcast %cst_105 : f32 to vector<16x16xf32>
    %187 = arith.select %7, %185, %186 : vector<16x16xi1>, vector<16x16xf32>
    %cst_106 = arith.constant dense<0xFF800000> : vector<16xf32>
    %188 = vector.multi_reduction <maximumf>, %187, %cst_106 [1] : vector<16x16xf32> to vector<16xf32>
    %189 = vector.shape_cast %188 : vector<16xf32> to vector<16x1xf32>
    %190 = vector.broadcast %189 : vector<16x1xf32> to vector<16x16xf32>
    %191 = arith.subf %187, %190 : vector<16x16xf32>
    %192 = math.exp %191 : vector<16x16xf32>
    %cst_107 = arith.constant 0.000000e+00 : f32
    %193 = vector.broadcast %cst_107 : f32 to vector<16x16xf32>
    %194 = arith.select %7, %192, %193 : vector<16x16xi1>, vector<16x16xf32>
    %cst_108 = arith.constant dense<0.000000e+00> : vector<16xf32>
    %195 = vector.multi_reduction <add>, %194, %cst_108 [1] : vector<16x16xf32> to vector<16xf32>
    %196 = vector.shape_cast %195 : vector<16xf32> to vector<16x1xf32>
    %cst_109 = arith.constant 1.000000e-30 : f32
    %197 = vector.broadcast %cst_109 : f32 to vector<16x1xf32>
    %198 = arith.maximumf %196, %197 : vector<16x1xf32>
    %199 = tpu.reciprocal %198 {approx = true} : vector<16x1xf32> -> vector<16x1xf32>
    %200 = vector.broadcast %199 : vector<16x1xf32> to vector<16x16xf32>
    %201 = arith.mulf %194, %200 : vector<16x16xf32>
    %202 = vector.extract_strided_slice %118 {offsets = [0, 16], sizes = [16, 16], strides = [1, 1]} : vector<16x32xf32> to vector<16x16xf32>
    %cst_110 = arith.constant dense<0.000000e+00> : vector<16x16xf32>
    %203 = tpu.matmul %201, %202, %cst_110 {dimension_numbers = #tpu.dot_dimension_numbers<[1], [0], [0], [1], [0, 0, 1, 1], [], []>} : vector<16x16xf32>, vector<16x16xf32>, vector<16x16xf32> -> vector<16x16xf32>
    %c16_111 = arith.constant 16 : index
    %c16_112 = arith.constant 16 : index
    %204 = vector.load %arg20[%c16_111, %c16_112] : memref<32x32xf32, #tpu.memory_space<vmem>>, vector<16x16xf32>
    tpu.vector_store %arg20[%c16_111, %c16_112], %203 {strides = array<i32>} : memref<32x32xf32, #tpu.memory_space<vmem>>, vector<16x16xf32>,
    %c0_113 = arith.constant 0 : index
    %c0_114 = arith.constant 0 : index
    %205 = vector.load %arg20[%c0_113, %c0_114] : memref<32x32xf32, #tpu.memory_space<vmem>>, vector<32x32xf32>
    %c0_115 = arith.constant 0 : index
    %c0_116 = arith.constant 0 : index
    %206 = vector.load %arg7[%c0_115, %c0_116] : memref<1x32xf32, #tpu.memory_space<vmem>>, vector<1x32xf32>
    %207 = vector.broadcast %206 : vector<1x32xf32> to vector<32x32xf32>
    %208 = arith.addf %205, %207 : vector<32x32xf32>
    %cst_117 = arith.constant 0.000000e+00 : f32
    %209 = vector.broadcast %cst_117 : f32 to vector<32x32xf32>
    %210 = arith.cmpf ogt, %208, %209 : vector<32x32xf32>
    %cst_118 = arith.constant 0.000000e+00 : f32
    %211 = vector.broadcast %cst_118 : f32 to vector<32x32xf32>
    %212 = arith.minimumf %208, %211 : vector<32x32xf32>
    %213 = math.exp %212 : vector<32x32xf32>
    %cst_119 = arith.constant 1.000000e+00 : f32
    %214 = vector.broadcast %cst_119 : f32 to vector<32x32xf32>
    %215 = arith.subf %213, %214 : vector<32x32xf32>
    %216 = arith.select %210, %208, %215 : vector<32x32xi1>, vector<32x32xf32>
    %c0_120 = arith.constant 0 : index
    %c0_121 = arith.constant 0 : index
    %217 = vector.load %arg9[%c0_120, %c0_121] : memref<32x32xf32, #tpu.memory_space<vmem>>, vector<32x32xf32>
    %cst_122 = arith.constant dense<0.000000e+00> : vector<32x32xf32>
    %218 = tpu.matmul %216, %217, %cst_122 {dimension_numbers = #tpu.dot_dimension_numbers<[1], [0], [0], [1], [0, 0, 1, 1], [], []>} : vector<32x32xf32>, vector<32x32xf32>, vector<32x32xf32> -> vector<32x32xf32>
    %c0_123 = arith.constant 0 : index
    %c0_124 = arith.constant 0 : index
    %219 = vector.load %arg10[%c0_123, %c0_124] : memref<32x2xf32, #tpu.memory_space<vmem>>, vector<32x2xf32>
    %cst_125 = arith.constant dense<0.000000e+00> : vector<32x2xf32>
    %220 = tpu.matmul %218, %219, %cst_125 {dimension_numbers = #tpu.dot_dimension_numbers<[1], [0], [0], [1], [0, 0, 1, 1], [], []>} : vector<32x32xf32>, vector<32x2xf32>, vector<32x2xf32> -> vector<32x2xf32>
    %c0_126 = arith.constant 0 : index
    %c0_127 = arith.constant 0 : index
    %221 = vector.load %arg11[%c0_126, %c0_127] : memref<2x32xf32, #tpu.memory_space<vmem>>, vector<2x32xf32>
    %cst_128 = arith.constant dense<0.000000e+00> : vector<2x32xf32>
    %222 = tpu.matmul %221, %218, %cst_128 {dimension_numbers = #tpu.dot_dimension_numbers<[1], [1], [0], [0], [0, 0, 1, 0], [], []>} : vector<2x32xf32>, vector<32x32xf32>, vector<2x32xf32> -> vector<2x32xf32>
    %223 = vector.extract_strided_slice %218 {offsets = [0, 0], sizes = [16, 32], strides = [1, 1]} : vector<32x32xf32> to vector<16x32xf32>
    %224 = vector.extract_strided_slice %220 {offsets = [0, 0], sizes = [16, 1], strides = [1, 1]} : vector<32x2xf32> to vector<16x1xf32>
    %225 = vector.extract_strided_slice %222 {offsets = [0, 0], sizes = [1, 16], strides = [1, 1]} : vector<2x32xf32> to vector<1x16xf32>
    %c0_129 = arith.constant 0 : index
    %c0_130 = arith.constant 0 : index
    %226 = memref.load %arg13[%c0_129, %c0_130] : memref<4x2xf32, #tpu.memory_space<smem>>
    %227 = vector.broadcast %226 : f32 to vector<16x16xf32>
    %228 = arith.mulf %227, %9 : vector<16x16xf32>
    %c1_131 = arith.constant 1 : index
    %c0_132 = arith.constant 0 : index
    %229 = memref.load %arg13[%c1_131, %c0_132] : memref<4x2xf32, #tpu.memory_space<smem>>
    %230 = vector.broadcast %229 : f32 to vector<16x16xf32>
    %231 = arith.mulf %230, %11 : vector<16x16xf32>
    %232 = arith.addf %228, %231 : vector<16x16xf32>
    %c2_133 = arith.constant 2 : index
    %c0_134 = arith.constant 0 : index
    %233 = memref.load %arg13[%c2_133, %c0_134] : memref<4x2xf32, #tpu.memory_space<smem>>
    %234 = vector.broadcast %233 : f32 to vector<16x16xf32>
    %235 = arith.mulf %234, %13 : vector<16x16xf32>
    %236 = arith.addf %232, %235 : vector<16x16xf32>
    %c3_135 = arith.constant 3 : index
    %c0_136 = arith.constant 0 : index
    %237 = memref.load %arg13[%c3_135, %c0_136] : memref<4x2xf32, #tpu.memory_space<smem>>
    %238 = vector.broadcast %237 : f32 to vector<16x16xf32>
    %239 = arith.mulf %238, %15 : vector<16x16xf32>
    %240 = arith.addf %236, %239 : vector<16x16xf32>
    %241 = vector.broadcast %224 : vector<16x1xf32> to vector<16x16xf32>
    %242 = vector.broadcast %225 : vector<1x16xf32> to vector<16x16xf32>
    %243 = arith.addf %241, %242 : vector<16x16xf32>
    %244 = arith.addf %243, %240 : vector<16x16xf32>
    %cst_137 = arith.constant 2.000000e-01 : f32
    %245 = vector.broadcast %cst_137 : f32 to vector<16x16xf32>
    %246 = arith.mulf %245, %244 : vector<16x16xf32>
    %247 = arith.maximumf %244, %246 : vector<16x16xf32>
    %cst_138 = arith.constant -1.000000e+30 : f32
    %248 = vector.broadcast %cst_138 : f32 to vector<16x16xf32>
    %249 = arith.select %3, %247, %248 : vector<16x16xi1>, vector<16x16xf32>
    %cst_139 = arith.constant dense<0xFF800000> : vector<16xf32>
    %250 = vector.multi_reduction <maximumf>, %249, %cst_139 [1] : vector<16x16xf32> to vector<16xf32>
    %251 = vector.shape_cast %250 : vector<16xf32> to vector<16x1xf32>
    %252 = vector.broadcast %251 : vector<16x1xf32> to vector<16x16xf32>
    %253 = arith.subf %249, %252 : vector<16x16xf32>
    %254 = math.exp %253 : vector<16x16xf32>
    %cst_140 = arith.constant 0.000000e+00 : f32
    %255 = vector.broadcast %cst_140 : f32 to vector<16x16xf32>
    %256 = arith.select %3, %254, %255 : vector<16x16xi1>, vector<16x16xf32>
    %cst_141 = arith.constant dense<0.000000e+00> : vector<16xf32>
    %257 = vector.multi_reduction <add>, %256, %cst_141 [1] : vector<16x16xf32> to vector<16xf32>
    %258 = vector.shape_cast %257 : vector<16xf32> to vector<16x1xf32>
    %cst_142 = arith.constant 1.000000e-30 : f32
    %259 = vector.broadcast %cst_142 : f32 to vector<16x1xf32>
    %260 = arith.maximumf %258, %259 : vector<16x1xf32>
    %261 = tpu.reciprocal %260 {approx = true} : vector<16x1xf32> -> vector<16x1xf32>
    %262 = vector.broadcast %261 : vector<16x1xf32> to vector<16x16xf32>
    %263 = arith.mulf %256, %262 : vector<16x16xf32>
    %264 = vector.extract_strided_slice %223 {offsets = [0, 0], sizes = [16, 16], strides = [1, 1]} : vector<16x32xf32> to vector<16x16xf32>
    %cst_143 = arith.constant dense<0.000000e+00> : vector<16x16xf32>
    %265 = tpu.matmul %263, %264, %cst_143 {dimension_numbers = #tpu.dot_dimension_numbers<[1], [0], [0], [1], [0, 0, 1, 1], [], []>} : vector<16x16xf32>, vector<16x16xf32>, vector<16x16xf32> -> vector<16x16xf32>
    %c0_144 = arith.constant 0 : index
    %c0_145 = arith.constant 0 : index
    %266 = vector.load %arg20[%c0_144, %c0_145] : memref<32x32xf32, #tpu.memory_space<vmem>>, vector<16x16xf32>
    tpu.vector_store %arg20[%c0_144, %c0_145], %265 {strides = array<i32>} : memref<32x32xf32, #tpu.memory_space<vmem>>, vector<16x16xf32>,
    %267 = vector.extract_strided_slice %220 {offsets = [0, 1], sizes = [16, 1], strides = [1, 1]} : vector<32x2xf32> to vector<16x1xf32>
    %268 = vector.extract_strided_slice %222 {offsets = [1, 0], sizes = [1, 16], strides = [1, 1]} : vector<2x32xf32> to vector<1x16xf32>
    %c0_146 = arith.constant 0 : index
    %c1_147 = arith.constant 1 : index
    %269 = memref.load %arg13[%c0_146, %c1_147] : memref<4x2xf32, #tpu.memory_space<smem>>
    %270 = vector.broadcast %269 : f32 to vector<16x16xf32>
    %271 = arith.mulf %270, %9 : vector<16x16xf32>
    %c1_148 = arith.constant 1 : index
    %c1_149 = arith.constant 1 : index
    %272 = memref.load %arg13[%c1_148, %c1_149] : memref<4x2xf32, #tpu.memory_space<smem>>
    %273 = vector.broadcast %272 : f32 to vector<16x16xf32>
    %274 = arith.mulf %273, %11 : vector<16x16xf32>
    %275 = arith.addf %271, %274 : vector<16x16xf32>
    %c2_150 = arith.constant 2 : index
    %c1_151 = arith.constant 1 : index
    %276 = memref.load %arg13[%c2_150, %c1_151] : memref<4x2xf32, #tpu.memory_space<smem>>
    %277 = vector.broadcast %276 : f32 to vector<16x16xf32>
    %278 = arith.mulf %277, %13 : vector<16x16xf32>
    %279 = arith.addf %275, %278 : vector<16x16xf32>
    %c3_152 = arith.constant 3 : index
    %c1_153 = arith.constant 1 : index
    %280 = memref.load %arg13[%c3_152, %c1_153] : memref<4x2xf32, #tpu.memory_space<smem>>
    %281 = vector.broadcast %280 : f32 to vector<16x16xf32>
    %282 = arith.mulf %281, %15 : vector<16x16xf32>
    %283 = arith.addf %279, %282 : vector<16x16xf32>
    %284 = vector.broadcast %267 : vector<16x1xf32> to vector<16x16xf32>
    %285 = vector.broadcast %268 : vector<1x16xf32> to vector<16x16xf32>
    %286 = arith.addf %284, %285 : vector<16x16xf32>
    %287 = arith.addf %286, %283 : vector<16x16xf32>
    %cst_154 = arith.constant 2.000000e-01 : f32
    %288 = vector.broadcast %cst_154 : f32 to vector<16x16xf32>
    %289 = arith.mulf %288, %287 : vector<16x16xf32>
    %290 = arith.maximumf %287, %289 : vector<16x16xf32>
    %cst_155 = arith.constant -1.000000e+30 : f32
    %291 = vector.broadcast %cst_155 : f32 to vector<16x16xf32>
    %292 = arith.select %3, %290, %291 : vector<16x16xi1>, vector<16x16xf32>
    %cst_156 = arith.constant dense<0xFF800000> : vector<16xf32>
    %293 = vector.multi_reduction <maximumf>, %292, %cst_156 [1] : vector<16x16xf32> to vector<16xf32>
    %294 = vector.shape_cast %293 : vector<16xf32> to vector<16x1xf32>
    %295 = vector.broadcast %294 : vector<16x1xf32> to vector<16x16xf32>
    %296 = arith.subf %292, %295 : vector<16x16xf32>
    %297 = math.exp %296 : vector<16x16xf32>
    %cst_157 = arith.constant 0.000000e+00 : f32
    %298 = vector.broadcast %cst_157 : f32 to vector<16x16xf32>
    %299 = arith.select %3, %297, %298 : vector<16x16xi1>, vector<16x16xf32>
    %cst_158 = arith.constant dense<0.000000e+00> : vector<16xf32>
    %300 = vector.multi_reduction <add>, %299, %cst_158 [1] : vector<16x16xf32> to vector<16xf32>
    %301 = vector.shape_cast %300 : vector<16xf32> to vector<16x1xf32>
    %cst_159 = arith.constant 1.000000e-30 : f32
    %302 = vector.broadcast %cst_159 : f32 to vector<16x1xf32>
    %303 = arith.maximumf %301, %302 : vector<16x1xf32>
    %304 = tpu.reciprocal %303 {approx = true} : vector<16x1xf32> -> vector<16x1xf32>
    %305 = vector.broadcast %304 : vector<16x1xf32> to vector<16x16xf32>
    %306 = arith.mulf %299, %305 : vector<16x16xf32>
    %307 = vector.extract_strided_slice %223 {offsets = [0, 16], sizes = [16, 16], strides = [1, 1]} : vector<16x32xf32> to vector<16x16xf32>
    %cst_160 = arith.constant dense<0.000000e+00> : vector<16x16xf32>
    %308 = tpu.matmul %306, %307, %cst_160 {dimension_numbers = #tpu.dot_dimension_numbers<[1], [0], [0], [1], [0, 0, 1, 1], [], []>} : vector<16x16xf32>, vector<16x16xf32>, vector<16x16xf32> -> vector<16x16xf32>
    %c0_161 = arith.constant 0 : index
    %c16_162 = arith.constant 16 : index
    %309 = vector.load %arg20[%c0_161, %c16_162] : memref<32x32xf32, #tpu.memory_space<vmem>>, vector<16x16xf32>
    tpu.vector_store %arg20[%c0_161, %c16_162], %308 {strides = array<i32>} : memref<32x32xf32, #tpu.memory_space<vmem>>, vector<16x16xf32>,
    %310 = vector.extract_strided_slice %218 {offsets = [16, 0], sizes = [16, 32], strides = [1, 1]} : vector<32x32xf32> to vector<16x32xf32>
    %311 = vector.extract_strided_slice %220 {offsets = [16, 0], sizes = [16, 1], strides = [1, 1]} : vector<32x2xf32> to vector<16x1xf32>
    %312 = vector.extract_strided_slice %222 {offsets = [0, 16], sizes = [1, 16], strides = [1, 1]} : vector<2x32xf32> to vector<1x16xf32>
    %c0_163 = arith.constant 0 : index
    %c0_164 = arith.constant 0 : index
    %313 = memref.load %arg13[%c0_163, %c0_164] : memref<4x2xf32, #tpu.memory_space<smem>>
    %314 = vector.broadcast %313 : f32 to vector<16x16xf32>
    %315 = arith.mulf %314, %17 : vector<16x16xf32>
    %c1_165 = arith.constant 1 : index
    %c0_166 = arith.constant 0 : index
    %316 = memref.load %arg13[%c1_165, %c0_166] : memref<4x2xf32, #tpu.memory_space<smem>>
    %317 = vector.broadcast %316 : f32 to vector<16x16xf32>
    %318 = arith.mulf %317, %19 : vector<16x16xf32>
    %319 = arith.addf %315, %318 : vector<16x16xf32>
    %c2_167 = arith.constant 2 : index
    %c0_168 = arith.constant 0 : index
    %320 = memref.load %arg13[%c2_167, %c0_168] : memref<4x2xf32, #tpu.memory_space<smem>>
    %321 = vector.broadcast %320 : f32 to vector<16x16xf32>
    %322 = arith.mulf %321, %21 : vector<16x16xf32>
    %323 = arith.addf %319, %322 : vector<16x16xf32>
    %c3_169 = arith.constant 3 : index
    %c0_170 = arith.constant 0 : index
    %324 = memref.load %arg13[%c3_169, %c0_170] : memref<4x2xf32, #tpu.memory_space<smem>>
    %325 = vector.broadcast %324 : f32 to vector<16x16xf32>
    %326 = arith.mulf %325, %23 : vector<16x16xf32>
    %327 = arith.addf %323, %326 : vector<16x16xf32>
    %328 = vector.broadcast %311 : vector<16x1xf32> to vector<16x16xf32>
    %329 = vector.broadcast %312 : vector<1x16xf32> to vector<16x16xf32>
    %330 = arith.addf %328, %329 : vector<16x16xf32>
    %331 = arith.addf %330, %327 : vector<16x16xf32>
    %cst_171 = arith.constant 2.000000e-01 : f32
    %332 = vector.broadcast %cst_171 : f32 to vector<16x16xf32>
    %333 = arith.mulf %332, %331 : vector<16x16xf32>
    %334 = arith.maximumf %331, %333 : vector<16x16xf32>
    %cst_172 = arith.constant -1.000000e+30 : f32
    %335 = vector.broadcast %cst_172 : f32 to vector<16x16xf32>
    %336 = arith.select %7, %334, %335 : vector<16x16xi1>, vector<16x16xf32>
    %cst_173 = arith.constant dense<0xFF800000> : vector<16xf32>
    %337 = vector.multi_reduction <maximumf>, %336, %cst_173 [1] : vector<16x16xf32> to vector<16xf32>
    %338 = vector.shape_cast %337 : vector<16xf32> to vector<16x1xf32>
    %339 = vector.broadcast %338 : vector<16x1xf32> to vector<16x16xf32>
    %340 = arith.subf %336, %339 : vector<16x16xf32>
    %341 = math.exp %340 : vector<16x16xf32>
    %cst_174 = arith.constant 0.000000e+00 : f32
    %342 = vector.broadcast %cst_174 : f32 to vector<16x16xf32>
    %343 = arith.select %7, %341, %342 : vector<16x16xi1>, vector<16x16xf32>
    %cst_175 = arith.constant dense<0.000000e+00> : vector<16xf32>
    %344 = vector.multi_reduction <add>, %343, %cst_175 [1] : vector<16x16xf32> to vector<16xf32>
    %345 = vector.shape_cast %344 : vector<16xf32> to vector<16x1xf32>
    %cst_176 = arith.constant 1.000000e-30 : f32
    %346 = vector.broadcast %cst_176 : f32 to vector<16x1xf32>
    %347 = arith.maximumf %345, %346 : vector<16x1xf32>
    %348 = tpu.reciprocal %347 {approx = true} : vector<16x1xf32> -> vector<16x1xf32>
    %349 = vector.broadcast %348 : vector<16x1xf32> to vector<16x16xf32>
    %350 = arith.mulf %343, %349 : vector<16x16xf32>
    %351 = vector.extract_strided_slice %310 {offsets = [0, 0], sizes = [16, 16], strides = [1, 1]} : vector<16x32xf32> to vector<16x16xf32>
    %cst_177 = arith.constant dense<0.000000e+00> : vector<16x16xf32>
    %352 = tpu.matmul %350, %351, %cst_177 {dimension_numbers = #tpu.dot_dimension_numbers<[1], [0], [0], [1], [0, 0, 1, 1], [], []>} : vector<16x16xf32>, vector<16x16xf32>, vector<16x16xf32> -> vector<16x16xf32>
    %c16_178 = arith.constant 16 : index
    %c0_179 = arith.constant 0 : index
    %353 = vector.load %arg20[%c16_178, %c0_179] : memref<32x32xf32, #tpu.memory_space<vmem>>, vector<16x16xf32>
    tpu.vector_store %arg20[%c16_178, %c0_179], %352 {strides = array<i32>} : memref<32x32xf32, #tpu.memory_space<vmem>>, vector<16x16xf32>,
    %354 = vector.extract_strided_slice %220 {offsets = [16, 1], sizes = [16, 1], strides = [1, 1]} : vector<32x2xf32> to vector<16x1xf32>
    %355 = vector.extract_strided_slice %222 {offsets = [1, 16], sizes = [1, 16], strides = [1, 1]} : vector<2x32xf32> to vector<1x16xf32>
    %c0_180 = arith.constant 0 : index
    %c1_181 = arith.constant 1 : index
    %356 = memref.load %arg13[%c0_180, %c1_181] : memref<4x2xf32, #tpu.memory_space<smem>>
    %357 = vector.broadcast %356 : f32 to vector<16x16xf32>
    %358 = arith.mulf %357, %17 : vector<16x16xf32>
    %c1_182 = arith.constant 1 : index
    %c1_183 = arith.constant 1 : index
    %359 = memref.load %arg13[%c1_182, %c1_183] : memref<4x2xf32, #tpu.memory_space<smem>>
    %360 = vector.broadcast %359 : f32 to vector<16x16xf32>
    %361 = arith.mulf %360, %19 : vector<16x16xf32>
    %362 = arith.addf %358, %361 : vector<16x16xf32>
    %c2_184 = arith.constant 2 : index
    %c1_185 = arith.constant 1 : index
    %363 = memref.load %arg13[%c2_184, %c1_185] : memref<4x2xf32, #tpu.memory_space<smem>>
    %364 = vector.broadcast %363 : f32 to vector<16x16xf32>
    %365 = arith.mulf %364, %21 : vector<16x16xf32>
    %366 = arith.addf %362, %365 : vector<16x16xf32>
    %c3_186 = arith.constant 3 : index
    %c1_187 = arith.constant 1 : index
    %367 = memref.load %arg13[%c3_186, %c1_187] : memref<4x2xf32, #tpu.memory_space<smem>>
    %368 = vector.broadcast %367 : f32 to vector<16x16xf32>
    %369 = arith.mulf %368, %23 : vector<16x16xf32>
    %370 = arith.addf %366, %369 : vector<16x16xf32>
    %371 = vector.broadcast %354 : vector<16x1xf32> to vector<16x16xf32>
    %372 = vector.broadcast %355 : vector<1x16xf32> to vector<16x16xf32>
    %373 = arith.addf %371, %372 : vector<16x16xf32>
    %374 = arith.addf %373, %370 : vector<16x16xf32>
    %cst_188 = arith.constant 2.000000e-01 : f32
    %375 = vector.broadcast %cst_188 : f32 to vector<16x16xf32>
    %376 = arith.mulf %375, %374 : vector<16x16xf32>
    %377 = arith.maximumf %374, %376 : vector<16x16xf32>
    %cst_189 = arith.constant -1.000000e+30 : f32
    %378 = vector.broadcast %cst_189 : f32 to vector<16x16xf32>
    %379 = arith.select %7, %377, %378 : vector<16x16xi1>, vector<16x16xf32>
    %cst_190 = arith.constant dense<0xFF800000> : vector<16xf32>
    %380 = vector.multi_reduction <maximumf>, %379, %cst_190 [1] : vector<16x16xf32> to vector<16xf32>
    %381 = vector.shape_cast %380 : vector<16xf32> to vector<16x1xf32>
    %382 = vector.broadcast %381 : vector<16x1xf32> to vector<16x16xf32>
    %383 = arith.subf %379, %382 : vector<16x16xf32>
    %384 = math.exp %383 : vector<16x16xf32>
    %cst_191 = arith.constant 0.000000e+00 : f32
    %385 = vector.broadcast %cst_191 : f32 to vector<16x16xf32>
    %386 = arith.select %7, %384, %385 : vector<16x16xi1>, vector<16x16xf32>
    %cst_192 = arith.constant dense<0.000000e+00> : vector<16xf32>
    %387 = vector.multi_reduction <add>, %386, %cst_192 [1] : vector<16x16xf32> to vector<16xf32>
    %388 = vector.shape_cast %387 : vector<16xf32> to vector<16x1xf32>
    %cst_193 = arith.constant 1.000000e-30 : f32
    %389 = vector.broadcast %cst_193 : f32 to vector<16x1xf32>
    %390 = arith.maximumf %388, %389 : vector<16x1xf32>
    %391 = tpu.reciprocal %390 {approx = true} : vector<16x1xf32> -> vector<16x1xf32>
    %392 = vector.broadcast %391 : vector<16x1xf32> to vector<16x16xf32>
    %393 = arith.mulf %386, %392 : vector<16x16xf32>
    %394 = vector.extract_strided_slice %310 {offsets = [0, 16], sizes = [16, 16], strides = [1, 1]} : vector<16x32xf32> to vector<16x16xf32>
    %cst_194 = arith.constant dense<0.000000e+00> : vector<16x16xf32>
    %395 = tpu.matmul %393, %394, %cst_194 {dimension_numbers = #tpu.dot_dimension_numbers<[1], [0], [0], [1], [0, 0, 1, 1], [], []>} : vector<16x16xf32>, vector<16x16xf32>, vector<16x16xf32> -> vector<16x16xf32>
    %c16_195 = arith.constant 16 : index
    %c16_196 = arith.constant 16 : index
    %396 = vector.load %arg20[%c16_195, %c16_196] : memref<32x32xf32, #tpu.memory_space<vmem>>, vector<16x16xf32>
    tpu.vector_store %arg20[%c16_195, %c16_196], %395 {strides = array<i32>} : memref<32x32xf32, #tpu.memory_space<vmem>>, vector<16x16xf32>,
    %c0_197 = arith.constant 0 : index
    %c0_198 = arith.constant 0 : index
    %397 = vector.load %arg20[%c0_197, %c0_198] : memref<32x32xf32, #tpu.memory_space<vmem>>, vector<32x32xf32>
    %c0_199 = arith.constant 0 : index
    %c0_200 = arith.constant 0 : index
    %398 = vector.load %arg12[%c0_199, %c0_200] : memref<1x32xf32, #tpu.memory_space<vmem>>, vector<1x32xf32>
    %399 = vector.broadcast %398 : vector<1x32xf32> to vector<32x32xf32>
    %400 = arith.addf %397, %399 : vector<32x32xf32>
    %cst_201 = arith.constant 0.000000e+00 : f32
    %401 = vector.broadcast %cst_201 : f32 to vector<32x32xf32>
    %402 = arith.cmpf ogt, %400, %401 : vector<32x32xf32>
    %cst_202 = arith.constant 0.000000e+00 : f32
    %403 = vector.broadcast %cst_202 : f32 to vector<32x32xf32>
    %404 = arith.minimumf %400, %403 : vector<32x32xf32>
    %405 = math.exp %404 : vector<32x32xf32>
    %cst_203 = arith.constant 1.000000e+00 : f32
    %406 = vector.broadcast %cst_203 : f32 to vector<32x32xf32>
    %407 = arith.subf %405, %406 : vector<32x32xf32>
    %408 = arith.select %402, %400, %407 : vector<32x32xi1>, vector<32x32xf32>
    %409 = vector.extract_strided_slice %408 {offsets = [0, 0], sizes = [16, 32], strides = [1, 1]} : vector<32x32xf32> to vector<16x32xf32>
    %cst_204 = arith.constant dense<0.000000e+00> : vector<32xf32>
    %410 = vector.multi_reduction <add>, %409, %cst_204 [0] : vector<16x32xf32> to vector<32xf32>
    %411 = vector.shape_cast %410 : vector<32xf32> to vector<1x32xf32>
    %cst_205 = arith.constant 1.600000e+01 : f32
    %412 = vector.broadcast %cst_205 : f32 to vector<1x32xf32>
    %413 = arith.divf %411, %412 : vector<1x32xf32>
    %cst_206 = arith.constant dense<0xFF800000> : vector<32xf32>
    %414 = vector.multi_reduction <maximumf>, %409, %cst_206 [0] : vector<16x32xf32> to vector<32xf32>
    %415 = vector.shape_cast %414 : vector<32xf32> to vector<1x32xf32>
    %416 = tpu.concatenate %413, %415 in 1 : vector<1x32xf32>, vector<1x32xf32> -> vector<1x64xf32>
    %417 = vector.extract_strided_slice %408 {offsets = [16, 0], sizes = [16, 32], strides = [1, 1]} : vector<32x32xf32> to vector<16x32xf32>
    %cst_207 = arith.constant dense<0.000000e+00> : vector<32xf32>
    %418 = vector.multi_reduction <add>, %417, %cst_207 [0] : vector<16x32xf32> to vector<32xf32>
    %419 = vector.shape_cast %418 : vector<32xf32> to vector<1x32xf32>
    %cst_208 = arith.constant 1.600000e+01 : f32
    %420 = vector.broadcast %cst_208 : f32 to vector<1x32xf32>
    %421 = arith.divf %419, %420 : vector<1x32xf32>
    %cst_209 = arith.constant dense<0xFF800000> : vector<32xf32>
    %422 = vector.multi_reduction <maximumf>, %417, %cst_209 [0] : vector<16x32xf32> to vector<32xf32>
    %423 = vector.shape_cast %422 : vector<32xf32> to vector<1x32xf32>
    %424 = tpu.concatenate %421, %423 in 1 : vector<1x32xf32>, vector<1x32xf32> -> vector<1x64xf32>
    %425 = tpu.concatenate %416, %424 in 0 : vector<1x64xf32>, vector<1x64xf32> -> vector<2x64xf32>
    %c0_210 = arith.constant 0 : index
    %c0_211 = arith.constant 0 : index
    %426 = vector.load %arg14[%c0_210, %c0_211] : memref<64x32xf32, #tpu.memory_space<vmem>>, vector<64x32xf32>
    %cst_212 = arith.constant dense<0.000000e+00> : vector<2x32xf32>
    %427 = tpu.matmul %425, %426, %cst_212 {dimension_numbers = #tpu.dot_dimension_numbers<[1], [0], [0], [1], [0, 0, 1, 1], [], []>} : vector<2x64xf32>, vector<64x32xf32>, vector<2x32xf32> -> vector<2x32xf32>
    %c0_213 = arith.constant 0 : index
    %c0_214 = arith.constant 0 : index
    %428 = vector.load %arg15[%c0_213, %c0_214] : memref<1x32xf32, #tpu.memory_space<vmem>>, vector<1x32xf32>
    %429 = vector.broadcast %428 : vector<1x32xf32> to vector<2x32xf32>
    %430 = arith.addf %427, %429 : vector<2x32xf32>
    %cst_215 = arith.constant 0.000000e+00 : f32
    %431 = vector.broadcast %cst_215 : f32 to vector<2x32xf32>
    %432 = arith.maximumf %430, %431 : vector<2x32xf32>
    %c0_216 = arith.constant 0 : index
    %c0_217 = arith.constant 0 : index
    %433 = vector.load %arg16[%c0_216, %c0_217] : memref<32x3xf32, #tpu.memory_space<vmem>>, vector<32x3xf32>
    %cst_218 = arith.constant dense<0.000000e+00> : vector<2x3xf32>
    %434 = tpu.matmul %432, %433, %cst_218 {dimension_numbers = #tpu.dot_dimension_numbers<[1], [0], [0], [1], [0, 0, 1, 1], [], []>} : vector<2x32xf32>, vector<32x3xf32>, vector<2x3xf32> -> vector<2x3xf32>
    %c0_219 = arith.constant 0 : index
    %c0_220 = arith.constant 0 : index
    %435 = vector.load %arg17[%c0_219, %c0_220] : memref<1x3xf32, #tpu.memory_space<vmem>>, vector<1x3xf32>
    %436 = vector.broadcast %435 : vector<1x3xf32> to vector<2x3xf32>
    %437 = arith.addf %434, %436 : vector<2x3xf32>
    %c0_221 = arith.constant 0 : index
    %c0_222 = arith.constant 0 : index
    %438 = vector.load %arg18[%c0_221, %c0_222] : memref<2x64xf32, #tpu.memory_space<vmem>>, vector<2x64xf32>
    tpu.vector_store %arg18[%c0_221, %c0_222], %425 {strides = array<i32>} : memref<2x64xf32, #tpu.memory_space<vmem>>, vector<2x64xf32>,
    %c0_223 = arith.constant 0 : index
    %c0_224 = arith.constant 0 : index
    %439 = vector.load %arg19[%c0_223, %c0_224] : memref<2x3xf32, #tpu.memory_space<vmem>>, vector<2x3xf32>
    tpu.vector_store %arg19[%c0_223, %c0_224], %437 {strides = array<i32>} : memref<2x3xf32, #tpu.memory_space<vmem>>, vector<2x3xf32>,
    return
  }
  func.func @transform_0(%arg0: i32) -> (i32, i32) {
    %c0_i32 = arith.constant 0 : i32
    %c0_i32_0 = arith.constant 0 : i32
    %c0_i32_1 = arith.constant 0 : i32
    return %c0_i32, %c0_i32_0 : i32, i32
  }
  func.func @transform_1(%arg0: i32) -> (i32, i32, i32) {
    %c0_i32 = arith.constant 0 : i32
    %c0_i32_0 = arith.constant 0 : i32
    %c0_i32_1 = arith.constant 0 : i32
    %c0_i32_2 = arith.constant 0 : i32
    return %c0_i32, %c0_i32_0, %c0_i32_1 : i32, i32, i32
  }
  func.func @transform_2(%arg0: i32) -> (i32, i32, i32, i32) {
    %c0_i32 = arith.constant 0 : i32
    %c0_i32_0 = arith.constant 0 : i32
    %c0_i32_1 = arith.constant 0 : i32
    %c0_i32_2 = arith.constant 0 : i32
    %c0_i32_3 = arith.constant 0 : i32
    return %c0_i32, %c0_i32_0, %c0_i32_1, %c0_i32_2 : i32, i32, i32, i32
  }
  func.func @transform_3(%arg0: i32) -> (i32, i32) {
    %c0_i32 = arith.constant 0 : i32
    %c0_i32_0 = arith.constant 0 : i32
    %c0_i32_1 = arith.constant 0 : i32
    return %c0_i32, %c0_i32_0 : i32, i32
  }
  func.func @transform_4(%arg0: i32) -> (i32, i32) {
    %c0_i32 = arith.constant 0 : i32
    %c0_i32_0 = arith.constant 0 : i32
    %c0_i32_1 = arith.constant 0 : i32
    return %c0_i32, %c0_i32_0 : i32, i32
  }
  func.func @transform_5(%arg0: i32) -> (i32, i32) {
    %c0_i32 = arith.constant 0 : i32
    %c0_i32_0 = arith.constant 0 : i32
    %c0_i32_1 = arith.constant 0 : i32
    return %c0_i32, %c0_i32_0 : i32, i32
  }
  func.func @transform_6(%arg0: i32) -> (i32, i32) {
    %c0_i32 = arith.constant 0 : i32
    %c0_i32_0 = arith.constant 0 : i32
    %c0_i32_1 = arith.constant 0 : i32
    return %c0_i32, %c0_i32_0 : i32, i32
  }
  func.func @transform_7(%arg0: i32) -> (i32, i32) {
    %c0_i32 = arith.constant 0 : i32
    %c0_i32_0 = arith.constant 0 : i32
    %c0_i32_1 = arith.constant 0 : i32
    return %c0_i32, %c0_i32_0 : i32, i32
  }
  func.func @transform_8(%arg0: i32) -> (i32, i32) {
    %c0_i32 = arith.constant 0 : i32
    %c0_i32_0 = arith.constant 0 : i32
    %c0_i32_1 = arith.constant 0 : i32
    return %c0_i32, %c0_i32_0 : i32, i32
  }
  func.func @transform_9(%arg0: i32) -> (i32, i32) {
    %c0_i32 = arith.constant 0 : i32
    %c0_i32_0 = arith.constant 0 : i32
    %c0_i32_1 = arith.constant 0 : i32
    return %c0_i32, %c0_i32_0 : i32, i32
  }
  func.func @transform_10(%arg0: i32) -> (i32, i32) {
    %c0_i32 = arith.constant 0 : i32
    %c0_i32_0 = arith.constant 0 : i32
    %c0_i32_1 = arith.constant 0 : i32
    return %c0_i32, %c0_i32_0 : i32, i32
  }
  func.func @transform_11(%arg0: i32) -> (i32, i32) {
    %c0_i32 = arith.constant 0 : i32
    %c0_i32_0 = arith.constant 0 : i32
    %c0_i32_1 = arith.constant 0 : i32
    return %c0_i32, %c0_i32_0 : i32, i32
  }
  func.func @transform_12(%arg0: i32) -> (i32, i32) {
    %c0_i32 = arith.constant 0 : i32
    %c0_i32_0 = arith.constant 0 : i32
    %c0_i32_1 = arith.constant 0 : i32
    return %c0_i32, %c0_i32_0 : i32, i32
  }
  func.func @transform_13(%arg0: i32) -> (i32, i32) {
    %c0_i32 = arith.constant 0 : i32
    %c0_i32_0 = arith.constant 0 : i32
    %c0_i32_1 = arith.constant 0 : i32
    return %c0_i32, %c0_i32_0 : i32, i32
  }
  func.func @transform_14(%arg0: i32) -> (i32, i32) {
    %c0_i32 = arith.constant 0 : i32
    %c0_i32_0 = arith.constant 0 : i32
    %c0_i32_1 = arith.constant 0 : i32
    return %c0_i32, %c0_i32_0 : i32, i32
  }
  func.func @transform_15(%arg0: i32) -> (i32, i32) {
    %c0_i32 = arith.constant 0 : i32
    %c0_i32_0 = arith.constant 0 : i32
    %c0_i32_1 = arith.constant 0 : i32
    return %c0_i32, %c0_i32_0 : i32, i32
  }
  func.func @transform_16(%arg0: i32) -> (i32, i32) {
    %c0_i32 = arith.constant 0 : i32
    %c0_i32_0 = arith.constant 0 : i32
    %c0_i32_1 = arith.constant 0 : i32
    return %c0_i32, %c0_i32_0 : i32, i32
  }
  func.func @transform_17(%arg0: i32) -> (i32, i32) {
    %c0_i32 = arith.constant 0 : i32
    %c0_i32_0 = arith.constant 0 : i32
    %c0_i32_1 = arith.constant 0 : i32
    return %c0_i32, %c0_i32_0 : i32, i32
  }
  func.func @transform_18(%arg0: i32) -> (i32, i32) {
    %c0_i32 = arith.constant 0 : i32
    %c0_i32_0 = arith.constant 0 : i32
    %c0_i32_1 = arith.constant 0 : i32
    return %c0_i32, %c0_i32_0 : i32, i32
  }
}

</mosaic_0001>

<bundles_post_ra>
// kernel: homogeneous_gat_ed_mlp_forward.1
= control target key start
LH: loop header
LB: loop body
LE: loop exit
PB: predicated region body
PF: predicated region fallthrough
CT: control target
= control target key end

     0   :  { %s3853_s0 = inlined_call_operand.vmem [shape: f32[32,8], index: 0, kind: input, shape index: {}]   ;;  %s3854_s1 = inlined_call_operand.vmem [shape: f32[2,16,16], index: 1, kind: input, shape index: {}]   ;;  %s3855_s2 = inlined_call_operand.vmem [shape: f32[2,4,16,16], index: 2, kind: input, shape index: {}]   ;;  %s3856_s3 = inlined_call_operand.vmem [shape: f32[8,32], index: 3, kind: input, shape index: {}]   ;;  %s3857_s4 = inlined_call_operand.vmem [shape: f32[32,2], index: 4, kind: input, shape index: {}]   ;;  %s3858_s5 = inlined_call_operand.vmem [shape: f32[2,32], index: 5, kind: input, shape index: {}]   ;;  %s3859_s6 = inlined_call_operand.vmem [shape: f32[1,32], index: 6, kind: input, shape index: {}, may-alias: {6,11,14}]   ;;  %s3860_s7 = inlined_call_operand.vmem [shape: f32[4,2], index: 7, kind: input, shape index: {}]   ;;  %s3861_s8 = inlined_call_operand.vmem [shape: f32[32,32], index: 8, kind: input, shape index: {}]   ;;  %s3862_s9 = inlined_call_operand.vmem [shape: f32[32,2], index: 9, kind: input, shape index: {}]   ;;  %s3863_s10 = inlined_call_operand.vmem [shape: f32[2,32], index: 10, kind: input, shape index: {}]   ;;  %s3864_s11 = inlined_call_operand.vmem [shape: f32[1,32], index: 11, kind: input, shape index: {}, may-alias: {6,11,14}]   ;;  %s3865_s12 = inlined_call_operand.vmem [shape: f32[4,2], index: 12, kind: input, shape index: {}]   ;;  %s3866_s13 = inlined_call_operand.vmem [shape: f32[64,32], index: 13, kind: input, shape index: {}]   ;;  %s3867_s14 = inlined_call_operand.vmem [shape: f32[1,32], index: 14, kind: input, shape index: {}, may-alias: {6,11,14}]   ;;  %s3868_s15 = inlined_call_operand.vmem [shape: f32[32,3], index: 15, kind: input, shape index: {}]   ;;  %s3869_s16 = inlined_call_operand.vmem [shape: f32[1,3], index: 16, kind: input, shape index: {}]   ;;  %s3870_s17 = inlined_call_operand.hbm [shape: f32[2,64], index: 17, kind: output, shape index: {0}]   ;;  %s3871_s18 = inlined_call_operand.hbm [shape: f32[2,3], index: 18, kind: output, shape index: {1}]  }
   0x1   :  { %3875 = sst [smem:[#allocation15_spill]] %s3853_s0 }
   0x2   :  { %3876 = sst [smem:[#allocation16_spill]] %s3854_s1 }
   0x3   :  { %3877 = sst [smem:[#allocation17_spill]] %s3855_s2 }
   0x4   :  { %24 = vsyncpa [#allocation5], 0 }
   0x5   :  { %25 = vsyncpa [#allocation7], 0 }
   0x6   :  { %26 = vsyncpa [#allocation4], 0 }
   0x7   :  { %27 = vsyncpa [#allocation10], 0  ;;  %s48_s29 = sshll.u32 %s3860_s7, 4  ;;  %s66_s19 = sshll.u32 %s3865_s12, 4  ;;  %s49_s29 = int_to_ptr.vmem [resolvable:$true] %s48_s29  ;;  %s67_s19 = int_to_ptr.vmem [resolvable:$true] %s66_s19 }
   0x8   :  { %s2905_s1 = scalar_lea.vmem %s49_s29, 64  ;;  %p2910_p1 = scmp.lt.s32.totalorder %s49_s29, %s49_s29 }
   0x9   :  { %p2906_p0 = scmp.ne.s32.totalorder %s49_s29, %s2905_s1  ;;  %p2911_p2 = scmp.lt.s32.totalorder %s2905_s1, %s2905_s1 }
   0xb   :  { %p2912_p3 = por %p2911_p2, %p2910_p1 }
   0xd   :  { %p2913_p4 = pnand %p2912_p3, %p2906_p0 }
   0xf   :  { %2916 = shalt.err (!%p2913_p4)
}
  0x10   :  { %s2981_s20 = smov [#allocation3]   ;;  %s2917_s21 = scalar_lea.vmem %s67_s19, 64 }
  0x11   :  { %51 = dma.vmem_to_smem %s49_s29, 64, %s2981_s20, [#allocation5]  }
  0x12   :  { %p2918_p5 = scmp.ne.s32.totalorder %s67_s19, %s2917_s21  ;;  %p2922_p6 = scmp.lt.s32.totalorder %s67_s19, %s67_s19 }
  0x13   :  { %p2923_p7 = scmp.lt.s32.totalorder %s2917_s21, %s2917_s21 }
  0x15   :  { %p2924_p8 = por %p2923_p7, %p2922_p6 }
  0x17   :  { %p2925_p9 = pnand %p2924_p8, %p2918_p5 }
  0x19   :  { %2928 = shalt.err (!%p2925_p9)
}
  0x1a   :  { %s2982_s7 = smov [#allocation6]  }
  0x1b   :  { %69 = dma.vmem_to_smem %s67_s19, 64, %s2982_s7, [#allocation7]  }
  0x1c   :  { %2973 = dma.done.wait [#allocation5], 64  }
  0x1d   :  { %2974 = vsyncadd [#allocation5], 4294967232 }
  0x1e   :  { %2975 = dma.done.wait [#allocation7], 64  }
  0x1f   :  { %2976 = vsyncadd [#allocation7], 4294967232 }
  0x20   :  { %84 = sfence }
  0x21   :  { %v121_v0 = vld [vmem:[%s3856_s3] sm:$0xff]  ;;  %s3878_s24 = sld [smem:[#allocation15_spill]]  ;;  %vm122_vm0 = vcmask 64512   ;;  %v221_v5 = vld [vmem:[%s3857_s4 + $0x8] sm:$0xff]  ;;  %v222_v6 = vld [vmem:[%s3857_s4 + $0x10] sm:$0xff]  ;;  %v2983_v11 = vmov 0.0|0.0  }
  0x22   :  { %2535 = vmatprep.subr.mxu0 %v121_v0  ;;  %v220_v4 = vld [vmem:[%s3857_s4] sm:$0xff]  ;;  %v223_v7 = vld [vmem:[%s3857_s4 + $0x18] sm:$0xff]  ;;  %vm2984_vm1 = vmmov 0   ;;  %v2985_v12 = vmov 0.0   ;;  %s2395_s4 = sld [smem:[#allocation3 + $0x1]]  ;;  %v2986_v13 = vmov 1  }
  0x23   :  { %2536 = vmatpush3.msra.mxu0 %v121_v0  ;;  %v2693_v8 = vpack.c.bf16 %v221_v5, %v220_v4  ;;  %v2697_v9 = vpack.c.bf16 %v223_v7, %v222_v6  ;;  %s2396_s22 = sld [smem:[#allocation3 + $0x81]]  ;;  %2796 = vset.pattern.permute.xlu1 %v2986_v13  ;;  %s3879_s26 = sld [smem:[#allocation17_spill]]  ;;  %vm224_vm2 = vcmask 261120   ;;  %v322_v49 = vld [vmem:[%s3858_s5] sm:$0x3]  ;;  %vm442_vm6 = vcmask 130048  }
  0x24   :  { %2701 = vmatprep.subr.bf16.mxu0 %v2983_v11  ;;  %s2397_s2 = sld [smem:[#allocation3 + $0x101]]  ;;  %2795 = vset.pattern.permute.xlu0 %v2986_v13  ;;  %vm3202_vm3 = vmpackc.low %vm224_vm2, %vm224_vm2  ;;  %s720_s25 = sld [smem:[#allocation3]]  ;;  %vm717_vm9 = vcmask 261248  }
  0x25   :  { %2694 = vmatprep.subr.bf16.mxu1 %v2693_v8  ;;  %s2398_s23 = sld [smem:[#allocation3 + $0x181]]  ;;  %s2390_s27 = sld [smem:[#allocation3 + $0x80]] }
  0x26   :  { %2696 = vmatpush3.bf16.msra.mxu1 %v2693_v8  ;;  %s2391_s28 = sld [smem:[#allocation3 + $0x100]]  ;;  %s2989_s19 = smov 112  }
  0x27   :  { %v117_v1 = vld [vmem:[%s3878_s24] sm:$0xff]  ;;  %v118_v2 = vld [vmem:[%s3878_s24 + $0x8] sm:$0xff]  ;;  %v119_v3 = vld [vmem:[%s3878_s24 + $0x10] sm:$0xff]  ;;  %2698 = vmatprep.subr.bf16.mxu1 %v2697_v9  ;;  %s2392_s29 = sld [smem:[#allocation3 + $0x180]]  ;;  %s3882_s5 = sld [smem:[#allocation16_spill]] }
  0x28   :  { %2537 = vmatprep.mubr.msk.f32.mxu0 %vm122_vm0, %v117_v1  ;;  %v120_v10 = vld [vmem:[%s3878_s24 + $0x18] sm:$0xff]  ;;  %v3160_v20 = vstv %s2395_s4  ;;  %s2435_s21 = sld [smem:[#allocation6 + $0x1]]  ;;  %s2430_s24 = sld [smem:[#allocation6 + $0x80]] }
  0x29   :  { %2538 = vmatmul.mubr.msk.f32.vlgmr.msra.gmra.mrb[0].mxu0 %vm122_vm0, %v118_v2  ;;  %v3133_v14 = vld [vmem:[%s3879_s26 + $0x40] sm:$0xff]  ;;  %v3138_v15 = vld [vmem:[%s3879_s26 + $0x48] sm:$0xff]  ;;  %v3143_v16 = vld [vmem:[%s3879_s26 + $0x50] sm:$0xff]  ;;  %v3171_v24 = vstv %s2396_s22  ;;  %s2987_s22 = smov 16   ;;  %v2988_v2 = vmov 0   ;;  %s2436_s7 = sld [smem:[#allocation6 + $0x81]] }
  0x2a   :  { %2540 = vmatprep.mubr.msk.f32.mxu0 %vm122_vm0, %v119_v3  ;;  %2700 = vmatpush3.bf16.msra.mxu1 %v2697_v9  ;;  %v3148_v17 = vld [vmem:[%s3879_s26 + $0x58] sm:$0xff]  ;;  %v3153_v18 = vld [vmem:[%s3879_s26 + $0x60] sm:$0xff]  ;;  %v3158_v19 = vld [vmem:[%s3879_s26 + $0x68] sm:$0xff]  ;;  %v889_v22 = vmul.f32 %v3133_v14, %v3160_v20  ;;  %v890_v23 = vmul.f32 %v3138_v15, %v3160_v20  ;;  %v893_v25 = vmul.f32 %v3143_v16, %v3171_v24  ;;  %v3177_v27 = vstv %s2397_s2  ;;  %s2437_s12 = sld [smem:[#allocation6 + $0x101]]  ;;  %s2431_s2 = sld [smem:[#allocation6 + $0x100]] }
  0x2b   :  { %v3165_v21 = vld [vmem:[%s3879_s26 + $0x70] sm:$0xff]  ;;  %v894_v26 = vmul.f32 %v3148_v17, %v3171_v24  ;;  %v3179_v28 = vstv %s2398_s23  ;;  %v3184_v29 = vld [vmem:[%s3879_s26 + $0x78] sm:$0xff]  ;;  %v899_v30 = vmul.f32 %v3153_v18, %v3177_v27  ;;  %v900_v31 = vmul.f32 %v3158_v19, %v3177_v27  ;;  %s2438_s4 = sld [smem:[#allocation6 + $0x181]]  ;;  %s2432_s23 = sld [smem:[#allocation6 + $0x180]] }
  0x2c   :  { %v895_v32 = vadd.f32 %v893_v25, %v889_v22  ;;  %v905_v33 = vmul.f32 %v3165_v21, %v3179_v28  ;;  %v906_v36 = vmul.f32 %v3184_v29, %v3179_v28  ;;  %v3239_v50 = vstv %s720_s25 }
  0x2d   :  { %2541 = vmatmul.mubr.msk.f32.gmra.mrb[2].mxu0 %vm122_vm0, %v120_v10  ;;  %v896_v34 = vadd.f32 %v894_v26, %v890_v23  ;;  %v3241_v51 = vstv %s2390_s27  ;;  %v722_v52 = vmul.f32 %v3133_v14, %v3239_v50  ;;  %v3247_v54 = vstv %s2391_s28 }
  0x2e   :  { %2565 = vmatprep.mubr.msk.f32.mxu0 %vm2984_vm1, %v2985_v12  ;;  %v901_v35 = vadd.f32 %v899_v30, %v895_v32  ;;  %v726_v53 = vmul.f32 %v3143_v16, %v3241_v51  ;;  %v732_v56 = vmul.f32 %v3153_v18, %v3247_v54  ;;  %v3251_v57 = vstv %s2392_s29 }
  0x2f   :  { %v902_v37 = vadd.f32 %v900_v31, %v896_v34  ;;  %v738_v61 = vmul.f32 %v3165_v21, %v3251_v57  ;;  %v723_v62 = vmul.f32 %v3138_v15, %v3239_v50  ;;  %v727_v63 = vmul.f32 %v3148_v17, %v3241_v51 }
  0x30   :  { %v907_v38 = vadd.f32 %v905_v33, %v901_v35  ;;  %v728_v55 = vadd.f32 %v726_v53, %v722_v52  ;;  %v733_v5 = vmul.f32 %v3158_v19, %v3247_v54  ;;  %v739_v7 = vmul.f32 %v3184_v29, %v3251_v57  ;;  %v3282_v52 = vld [vmem:[%s3879_s26 + $0x18] sm:$0xff] }
  0x31   :  { %v908_v39 = vadd.f32 %v906_v36, %v902_v37  ;;  %v729_v4 = vadd.f32 %v727_v63, %v723_v62  ;;  %v428_v22 = vlaneseq  ;;  %v3303_v63 = vld [vmem:[%s3879_s26 + $0x28] sm:$0xff] }
  0x32   :  { %921 = vrot.lane.b32.xlu1 %v907_v38, %s2987_s22  ;;  %v734_v60 = vadd.f32 %v732_v56, %v728_v55  ;;  %v3288_v55 = vld [vmem:[%s3879_s26] sm:$0xff]  ;;  %v3293_v56 = vld [vmem:[%s3879_s26 + $0x10] sm:$0xff] }
  0x33   :  { %v735_v6 = vadd.f32 %v733_v5, %v729_v4  ;;  %v3269_v23 = vshrl.u32 %v428_v22, 7 }
  0x34   :  { %v740_v3 = vadd.f32 %v738_v61, %v734_v60  ;;  %v559_v61 = vmul.f32 %v3282_v52, %v3171_v24 }
  0x35   :  { %v741_v8 = vadd.f32 %v739_v7, %v735_v6  ;;  %v584_v25 = vsub.s32 1, %v3269_v23  ;;  %v565_v6 = vmul.f32 %v3303_v63, %v3177_v27 }
  0x36   :  { %923 = vrot.lane.b32.xlu1 %v908_v39, %s2987_s22 }
  0xa4   :  { %v922_v30 = vpop.permute.xlu1 %921 }
  0xa8   :  { %v924_v37 = vpop.permute.xlu1 %923 }
  0xfc   :  { %v3196_v40 = vpop.f32.mrb[0].mxu0 }
  0xfd   :  { %v3198_v41 = vpop.f32.mrb[1].mxu0 }
  0xfe   :  { %v2799_v43 = vpack.i.bf16 %v3196_v40, %v3198_v41  ;;  %v2702_v44 = vpack.c.bf16 %v3196_v40, %v3198_v41  ;;  %2551 = vmatprep.mubr.msk.f32.mxu1 %vm224_vm2, %v3198_v41 }
  0xff   :  { %2552 = vmatmul.mubr.msk.f32.vlgmr.msra.gmra.mrb[0].mxu1 %vm224_vm2, %v3196_v40 }
 0x100   :  { %v3214_v45 = vpop.f32.mrb[2].mxu0  ;;  %2704 = vmatpush3.bf16.xpose.msk.msra.mxu0 %vm3202_vm3, %v2702_v44 }
 0x101   :  { %v3218_v46 = vpop.f32.mrb[3].mxu0  ;;  %2705 = vmatprep.subr.bf16.mxu0 %v2983_v11 }
 0x102   :  { %v2804_v47 = vpack.i.bf16 %v3214_v45, %v3218_v46  ;;  %v3225_v48 = vpack.c.bf16 %v3214_v45, %v3218_v46  ;;  %2554 = vmatprep.mubr.msk.f32.mxu1 %vm224_vm2, %v3218_v46 }
 0x103   :  { %2555 = vmatmul.mubr.msk.f32.gmra.mrb[2].mxu1 %vm224_vm2, %v3214_v45 }
 0x108   :  { %2708 = vmatpush3.bf16.xpose.msk.msra.mxu0 %vm3202_vm3, %v3225_v48 }
 0x109   :  { %2710 = vmatprep.subr.bf16.mxu0 %v2702_v44 }
 0x10f   :  { %2566 = vmatmul.mubr.msk.f32.vlgmr.msra.gmra.mrb[4].mxu0 %vm224_vm2, %v322_v49  ;;  %v3277_v49 = vld [vmem:[%s3879_s26 + $0x8] sm:$0xff] }
 0x110   :  { %2712 = vmatpush3.bf16.msra.mxu0 %v2702_v44  ;;  %v555_v60 = vmul.f32 %v3160_v20, %v3277_v49 }
 0x111   :  { %2718 = vmatprep.subr.bf16.mxu0 %v3225_v48 }
 0x112   :  { %v561_v5 = vadd.f32 %v559_v61, %v555_v60  ;;  %v3346_v60 = vld [vmem:[%s3882_s5] sm:$0xff] }
 0x113   :  { %vm87_vm5 = vcmp.gt.f32.partialorder %v3346_v60, 0.0 }
 0x114   :  { %v567_v22 = vadd.f32 %v565_v6, %v561_v5 }
 0x1d2   :  { %v2553_v58 = vpop.f32.mrb[0].mxu1 }
 0x1d3   :  { %v303_v59 = vpop.f32.mrb[1].mxu1  ;;  %579 = vperm.xlu1 %2796, %v2553_v58  }
 0x1d6   :  { %v2556_v0 = vpop.f32.mrb[2].mxu1 }
 0x1d7   :  { %v313_v1 = vpop.f32.mrb[3].mxu1  ;;  %2797 = vset.pattern.permute.xlu1 %v2988_v2 }
 0x1d8   :  { %910 = vperm.xlu0 %2795, %v313_v1   ;;  %749 = vperm.xlu1 %2797, %v2556_v0  }
 0x1dc   :  { %914 = vperm.xlu0 %2795, %v2556_v0   ;;  %756 = vrot.lane.b32.xlu1 %v740_v3, %s2987_s22  ;;  %v554_v0 = vmul.f32 %v3160_v20, %v3288_v55  ;;  %v3313_v3 = vld [vmem:[%s3879_s26 + $0x20] sm:$0xff]  ;;  %v3324_v20 = vld [vmem:[%s3879_s26 + $0x38] sm:$0xff] }
 0x1e0   :  { %575 = vperm.xlu0 %2795, %v303_v59   ;;  %420 = vperm.xlu1 %2797, %v303_v59  }
 0x1e2   :  { %v392_v9 = vpop.f32.mrb[4].mxu0 }
 0x1e3   :  { %v2567_v10 = vpop.f32.mrb[5].mxu0  ;;  %v585_v26 = vrot.slane %v392_v9, %v584_v25 }
 0x1e4   :  { %758 = vrot.lane.b32.xlu0 %v741_v8, %s2987_s22  ;;  %2809 = vset.pattern.permute.xlu1 %v2986_v13  ;;  %v564_v8 = vmul.f32 %v3313_v3, %v3177_v27 }
 0x1e5   :  { %2798 = vset.pattern.permute.xlu0 %v2988_v2 }
 0x1e8   :  { %425 = vperm.xlu0 %2798, %v2553_v58   ;;  %v430_v58 = vsub.s32 0, %v3269_v23 }
 0x1ea   :  { %v3317_v4 = vrot.slane %v392_v9, %v430_v58  ;;  %v3332_v9 = vld [vmem:[%s3879_s26 + $0x30] sm:$0xff] }
 0x1ec   :  { %744 = vperm.xlu0 %2798, %v313_v1   ;;  %v558_v1 = vmul.f32 %v3293_v56, %v3171_v24 }
 0x1ee   :  { %v560_v24 = vadd.f32 %v558_v1, %v554_v0 }
 0x1f0   :  { %2810 = vset.pattern.permute.xlu0 %v2986_v13 }
 0x257   :  { %v911_v31 = vpop.permute.xlu0 %910 }
 0x258   :  { %v917_v32 = vadd.f32 %v911_v31, %v585_v26  ;;  %v580_v31 = vpop.permute.xlu1 %579 }
 0x25a   :  { %v927_v33 = vadd.f32 %v922_v30, %v917_v32  ;;  %v571_v30 = vmul.f32 %v3324_v20, %v3179_v28  ;;  %v566_v32 = vadd.f32 %v564_v8, %v560_v24 }
 0x25b   :  { %v915_v34 = vpop.permute.xlu0 %914 }
 0x25c   :  { %v929_v35 = vmul.f32 0.2, %v927_v33  ;;  %v918_v36 = vadd.f32 %v915_v34, %v585_v26  ;;  %v573_v34 = vadd.f32 %v571_v30, %v567_v22  ;;  %v750_v5 = vpop.permute.xlu1 %749 }
 0x25e   :  { %v928_v38 = vadd.f32 %v924_v37, %v918_v36  ;;  %v931_v39 = vmax.f32 %v927_v33, %v929_v35  ;;  %v570_v33 = vmul.f32 %v3332_v9, %v3179_v28  ;;  %v587_v35 = vadd.f32 %v585_v26, %v580_v31 }
 0x25f   :  { %v576_v44 = vpop.permute.xlu0 %575 }
 0x260   :  { %v930_v53 = vmul.f32 0.2, %v928_v38  ;;  %935 = vrot.lane.b32.xlu1 %v931_v39, %s2989_s19  ;;  %v572_v36 = vadd.f32 %v570_v33, %v566_v32  ;;  %v586_v27 = vadd.f32 %v585_v26, %v576_v44  ;;  %v589_v37 = vadd.f32 %v587_v35, %v573_v34  ;;  %v757_v22 = vpop.permute.xlu1 %756 }
 0x261   :  { %v399_v35 = vmul.f32 %v3239_v50, %v3277_v49 }
 0x262   :  { %v932_v59 = vmax.f32 %v928_v38, %v930_v53  ;;  %v588_v38 = vadd.f32 %v586_v27, %v572_v36  ;;  %v591_v39 = vmul.f32 0.2, %v589_v37  ;;  %v403_v36 = vmul.f32 %v3282_v52, %v3241_v51 }
 0x263   :  { %v759_v62 = vpop.permute.xlu0 %758  ;;  %v402_v27 = vmul.f32 %v3293_v56, %v3241_v51 }
 0x264   :  { %937 = vrot.lane.b32.xlu0 %v932_v59, %s2989_s19  ;;  %v590_v53 = vmul.f32 0.2, %v588_v38  ;;  %v3341_v59 = vld [vmem:[%s3882_s5 + $0x8] sm:$0xff]  ;;  %v593_v61 = vmax.f32 %v589_v37, %v591_v39  ;;  %v405_v37 = vadd.f32 %v403_v36, %v399_v35 }
 0x265   :  { %vm88_vm4 = vcmp.gt.f32.partialorder %v3341_v59, 0.0 }
 0x266   :  { %v592_v28 = vmax.f32 %v588_v38, %v590_v53  ;;  %v3352_v26 = vsel %vm88_vm4, %v593_v61, -1e+30  ;;  %v409_v38 = vmul.f32 %v3303_v63, %v3247_v54  ;;  %v408_v53 = vmul.f32 %v3313_v3, %v3247_v54  ;;  %v3386_v54 = vld [vmem:[%s3882_s5 + $0x10] sm:$0xff] }
 0x267   :  { %v426_v7 = vpop.permute.xlu0 %425  ;;  %v599_v0 = vsel %vm442_vm6, %v3352_v26, -inf  ;;  %vm92_vm7 = vcmp.gt.f32.partialorder %v3386_v54, 0.0 }
 0x268   :  { %v433_v10 = vadd.f32 %v3317_v4, %v426_v7  ;;  %v3356_v44 = vsel %vm87_vm5, %v592_v28, -1e+30  ;;  %v753_v7 = vadd.f32 %v750_v5, %v3317_v4  ;;  %v411_v61 = vadd.f32 %v409_v38, %v405_v37  ;;  %v421_v5 = vpop.permute.xlu1 %420 }
 0x269   :  { %v596_v1 = vsel %vm442_vm6, %v3356_v44, -inf  ;;  %v415_v28 = vmul.f32 %v3324_v20, %v3251_v57  ;;  %v432_v51 = vadd.f32 %v3317_v4, %v421_v5 }
 0x26a   :  { %v763_v24 = vadd.f32 %v759_v62, %v753_v7  ;;  %v398_v62 = vmul.f32 %v3239_v50, %v3288_v55 }
 0x26b   :  { %v745_v6 = vpop.permute.xlu0 %744  ;;  %v417_v50 = vadd.f32 %v415_v28, %v411_v61 }
 0x26c   :  { %v752_v8 = vadd.f32 %v745_v6, %v3317_v4  ;;  %v765_v30 = vmul.f32 0.2, %v763_v24  ;;  %v404_v39 = vadd.f32 %v402_v27, %v398_v62 }
 0x26d   :  { %v435_v7 = vadd.f32 %v433_v10, %v417_v50 }
 0x26e   :  { %v762_v31 = vadd.f32 %v757_v22, %v752_v8  ;;  %v767_v32 = vmax.f32 %v763_v24, %v765_v30 }
 0x26f   :  { %v437_v8 = vmul.f32 0.2, %v435_v7 }
 0x270   :  { %v764_v33 = vmul.f32 0.2, %v762_v31 }
 0x271   :  { %v439_v30 = vmax.f32 %v435_v7, %v437_v8 }
 0x272   :  { %v766_v34 = vmax.f32 %v762_v31, %v764_v33 }
 0x283   :  { %600 = vmax.xlane.f32.xlu0 %v599_v0  ;;  %v410_v0 = vadd.f32 %v408_v53, %v404_v39 }
 0x284   :  { %597 = vmax.xlane.f32.xlu1 %v596_v1  ;;  %v414_v1 = vmul.f32 %v3332_v9, %v3251_v57  ;;  %v3392_v57 = vld [vmem:[%s3882_s5 + $0x18] sm:$0xff] }
 0x285   :  { %vm93_vm8 = vcmp.gt.f32.partialorder %v3392_v57, 0.0 }
 0x286   :  { %v416_v6 = vadd.f32 %v414_v1, %v410_v0 }
 0x288   :  { %v434_v24 = vadd.f32 %v432_v51, %v416_v6 }
 0x28a   :  { %v436_v22 = vmul.f32 0.2, %v434_v24 }
 0x28c   :  { %v438_v33 = vmax.f32 %v434_v24, %v436_v22 }
 0x28e   :  { %v440_v27 = vsel %vm87_vm5, %v438_v33, -1e+30 }
 0x28f   :  { %v443_v37 = vsel %vm442_vm6, %v440_v27, -inf }
 0x295   :  { %772 = vrot.lane.b32.xlu1 %v767_v32, %s2989_s19  ;;  %v441_v32 = vsel %vm88_vm4, %v439_v30, -1e+30 }
 0x296   :  { %v446_v62 = vsel %vm442_vm6, %v441_v32, -inf }
 0x299   :  { %770 = vrot.lane.b32.xlu0 %v766_v34, %s2989_s19 }
 0x2d2   :  { %v936_v31 = vpop.permute.xlu1 %935 }
 0x2d3   :  { %v941_v4 = vsel %vm92_vm7, %v936_v31, -1e+30 }
 0x2d4   :  { %v943_v10 = vsel %vm442_vm6, %v941_v4, -inf }
 0x2d5   :  { %944 = vmax.xlane.f32.xlu1 %v943_v10 }
 0x2d6   :  { %v938_v34 = vpop.permute.xlu0 %937 }
 0x2d7   :  { %v942_v35 = vsel %vm93_vm8, %v938_v34, -1e+30 }
 0x2d8   :  { %v946_v36 = vsel %vm442_vm6, %v942_v35, -inf }
 0x2d9   :  { %947 = vmax.xlane.f32.xlu0 %v946_v36  ;;  %447 = vmax.xlane.f32.xlu1 %v446_v62 }
 0x2dd   :  { %444 = vmax.xlane.f32.xlu0 %v443_v37 }
 0x310   :  { %v601_v38 = vpop.xlane.xlu0 %600 }
 0x311   :  { %v603_v39 = vsub.f32 %v3352_v26, %v601_v38  ;;  %v598_v53 = vpop.xlane.xlu1 %597 }
 0x312   :  { %v602_v61 = vsub.f32 %v3356_v44, %v598_v53 }
 0x313   :  { %v606_v28 = vmul.f32 1.442695, %v603_v39 }
 0x314   :  { %v604_v0 = vmul.f32 1.442695, %v602_v61  ;;  %v771_v1 = vpop.permute.xlu0 %770 }
 0x315   :  { %2825 = vpow2.f32 %v606_v28  ;;  %v776_v50 = vsel %vm92_vm7, %v771_v1, -1e+30  ;;  %v773_v5 = vpop.permute.xlu1 %772 }
 0x316   :  { %2827 = vpow2.f32 %v604_v0  ;;  %v777_v6 = vsel %vm93_vm8, %v773_v5, -1e+30  ;;  %v778_v51 = vsel %vm442_vm6, %v776_v50, -inf }
 0x317   :  { %779 = vmax.xlane.f32.xlu0 %v778_v51  ;;  %v781_v26 = vsel %vm442_vm6, %v777_v6, -inf }
 0x318   :  { %782 = vmax.xlane.f32.xlu1 %v781_v26 }
 0x31f   :  { %v2826_v7 = vpop.eup %2825 }
 0x320   :  { %v2828_v44 = vpop.eup %2827  ;;  %v3417_v24 = vsel %vm88_vm4, %v2826_v7, 0.0 }
 0x321   :  { %v613_v8 = vsel %vm442_vm6, %v3417_v24, 0.0  ;;  %v608_v22 = vsel %vm87_vm5, %v2828_v44, 0.0 }
 0x322   :  { %614 = vadd.xlane.f32.xlu1 %v613_v8  ;;  %v610_v30 = vsel %vm442_vm6, %v608_v22, 0.0 }
 0x323   :  { %611 = vadd.xlane.f32.xlu0 %v610_v30 }
 0x362   :  { %v945_v31 = vpop.xlane.xlu1 %944 }
 0x363   :  { %v949_v10 = vsub.f32 %v941_v4, %v945_v31 }
 0x365   :  { %v951_v33 = vmul.f32 1.442695, %v949_v10 }
 0x366   :  { %v948_v34 = vpop.xlane.xlu0 %947 }
 0x367   :  { %2829 = vpow2.f32 %v951_v33  ;;  %v950_v36 = vsub.f32 %v942_v35, %v948_v34  ;;  %v448_v35 = vpop.xlane.xlu1 %447 }
 0x368   :  { %v450_v28 = vsub.f32 %v441_v32, %v448_v35 }
 0x369   :  { %v953_v62 = vmul.f32 1.442695, %v950_v36 }
 0x36a   :  { %v445_v0 = vpop.xlane.xlu0 %444  ;;  %v453_v1 = vmul.f32 1.442695, %v450_v28 }
 0x36b   :  { %2831 = vpow2.f32 %v953_v62  ;;  %v449_v5 = vsub.f32 %v440_v27, %v445_v0 }
 0x36c   :  { %2833 = vpow2.f32 %v453_v1 }
 0x36d   :  { %v451_v51 = vmul.f32 1.442695, %v449_v5 }
 0x36f   :  { %2835 = vpow2.f32 %v451_v51 }
 0x371   :  { %v2830_v37 = vpop.eup %2829 }
 0x372   :  { %v3426_v38 = vsel %vm92_vm7, %v2830_v37, 0.0 }
 0x373   :  { %v957_v39 = vsel %vm442_vm6, %v3426_v38, 0.0 }
 0x374   :  { %958 = vadd.xlane.f32.xlu0 %v957_v39 }
 0x375   :  { %v2832_v53 = vpop.eup %2831 }
 0x376   :  { %v3432_v61 = vsel %vm93_vm8, %v2832_v53, 0.0  ;;  %v2834_v26 = vpop.eup %2833 }
 0x377   :  { %v960_v4 = vsel %vm442_vm6, %v3432_v61, 0.0  ;;  %v3446_v45 = vsel %vm88_vm4, %v2834_v26, 0.0 }
 0x378   :  { %961 = vadd.xlane.f32.xlu1 %v960_v4 }
 0x379   :  { %v2836_v46 = vpop.eup %2835 }
 0x37a   :  { %v455_v32 = vsel %vm87_vm5, %v2836_v46, 0.0 }
 0x37b   :  { %v457_v27 = vsel %vm442_vm6, %v455_v32, 0.0 }
 0x389   :  { %2805 = vrot.lane.b32.xlu1 %v2804_v47, %s2989_s19 }
 0x38a   :  { %2800 = vrot.lane.b32.xlu0 %v2799_v43, %s2989_s19  ;;  %v460_v43 = vsel %vm442_vm6, %v3446_v45, 0.0 }
 0x3a4   :  { %v780_v7 = vpop.xlane.xlu0 %779 }
 0x3a5   :  { %v784_v44 = vsub.f32 %v776_v50, %v780_v7  ;;  %v783_v8 = vpop.xlane.xlu1 %782 }
 0x3a6   :  { %v785_v47 = vsub.f32 %v777_v6, %v783_v8 }
 0x3a7   :  { %v786_v40 = vmul.f32 1.442695, %v784_v44 }
 0x3a8   :  { %v788_v41 = vmul.f32 1.442695, %v785_v47 }
 0x3a9   :  { %2837 = vpow2.f32 %v786_v40  ;;  %461 = vadd.xlane.f32.xlu0 %v460_v43 }
 0x3aa   :  { %2839 = vpow2.f32 %v788_v41 }
 0x3ad   :  { %458 = vadd.xlane.f32.xlu1 %v457_v27 }
 0x3af   :  { %v615_v39 = vpop.xlane.xlu1 %614 }
 0x3b0   :  { %v612_v50 = vpop.xlane.xlu0 %611  ;;  %v617_v53 = vmax.f32 %v615_v39, 1e-30 }
 0x3b1   :  { %v616_v30 = vmax.f32 %v612_v50, 1e-30 }
 0x3b3   :  { %v2838_v31 = vpop.eup %2837  ;;  %2841 = vrcp.f32 %v616_v30 }
 0x3b4   :  { %v2840_v10 = vpop.eup %2839  ;;  %v790_v6 = vsel %vm92_vm7, %v2838_v31, 0.0  ;;  %2843 = vrcp.f32 %v617_v53 }
 0x3b5   :  { %v792_v33 = vsel %vm442_vm6, %v790_v6, 0.0  ;;  %v791_v34 = vsel %vm93_vm8, %v2840_v10, 0.0 }
 0x3b6   :  { %793 = vadd.xlane.f32.xlu0 %v792_v33  ;;  %v795_v36 = vsel %vm442_vm6, %v791_v34, 0.0 }
 0x3b7   :  { %796 = vadd.xlane.f32.xlu1 %v795_v36 }
 0x3bd   :  { %v2842_v62 = vpop.eup %2841 }
 0x3be   :  { %v620_v37 = vmul.f32 %v2842_v62, %v608_v22  ;;  %v2844_v7 = vpop.eup %2843 }
 0x3bf   :  { %v621_v22 = vmul.f32 %v2844_v7, %v3417_v24  ;;  %v1206_v7 = vld [vmem:[%s3862_s9] sm:$0xff] }
 0x3c0   :  { %2579 = vmatprep.mubr.msk.f32.mxu1 %vm442_vm6, %v620_v37 }
 0x401   :  { %v959_v4 = vpop.xlane.xlu0 %958 }
 0x402   :  { %v963_v35 = vmax.f32 %v959_v4, 1e-30 }
 0x404   :  { %2845 = vrcp.f32 %v963_v35 }
 0x405   :  { %v962_v28 = vpop.xlane.xlu1 %961  ;;  %v2801_v0 = vpop.permute.xlu0 %2800 }
 0x406   :  { %v964_v1 = vmax.f32 %v962_v28, 1e-30  ;;  %v2803_v5 = vunpack.i.h.bf16 %v2801_v0  ;;  %v2802_v51 = vunpack.i.l.bf16 %v2801_v0 }
 0x408   :  { %2847 = vrcp.f32 %v964_v1  ;;  %v2713_v26 = vpack.c.bf16 %v2803_v5, %v2802_v51 }
 0x409   :  { %v2806_v44 = vpop.permute.xlu1 %2805 }
 0x40a   :  { %v2808_v8 = vunpack.i.h.bf16 %v2806_v44  ;;  %v2807_v46 = vunpack.i.l.bf16 %v2806_v44  ;;  %2714 = vmatprep.subr.bf16.mxu1 %v2713_v26  ;;  %v1207_v44 = vld [vmem:[%s3862_s9 + $0x8] sm:$0xff] }
 0x40b   :  { %2716 = vmatpush3.bf16.msra.mxu1 %v2713_v26 }
 0x40c   :  { %v2721_v47 = vpack.c.bf16 %v2808_v8, %v2807_v46  ;;  %v1208_v8 = vld [vmem:[%s3862_s9 + $0x10] sm:$0xff]  ;;  %v2733_v46 = vpack.c.bf16 %v1207_v44, %v1206_v7 }
 0x40e   :  { %v2846_v40 = vpop.eup %2845  ;;  %2580 = vmatmul.mubr.msk.f32.vlgmr.msra.gmra.mrb[4].mxu1 %vm442_vm6, %v621_v22  ;;  %2722 = vmatprep.subr.bf16.mxu1 %v2721_v47  ;;  %v1209_v22 = vld [vmem:[%s3862_s9 + $0x18] sm:$0xff] }
 0x40f   :  { %2724 = vmatpush3.bf16.msra.mxu1 %v2721_v47  ;;  %v967_v41 = vmul.f32 %v2846_v40, %v3426_v38  ;;  %v2737_v47 = vpack.c.bf16 %v1209_v22, %v1208_v8 }
 0x410   :  { %2734 = vmatprep.subr.bf16.mxu1 %v2733_v46 }
 0x411   :  { %2593 = vmatprep.mubr.msk.f32.mxu1 %vm442_vm6, %v967_v41 }
 0x412   :  { %v2848_v43 = vpop.eup %2847 }
 0x413   :  { %v968_v27 = vmul.f32 %v2848_v43, %v3432_v61 }
 0x415   :  { %2594 = vmatmul.mubr.msk.f32.vlgmr.msra.gmra.mrb[6].mxu1 %vm442_vm6, %v968_v27 }
 0x416   :  { %2736 = vmatpush3.bf16.msra.mxu1 %v2733_v46 }
 0x417   :  { %2738 = vmatprep.subr.bf16.mxu1 %v2737_v47 }
 0x41a   :  { %2740 = vmatpush3.bf16.msra.mxu1 %v2737_v47 }
 0x436   :  { %v462_v50 = vpop.xlane.xlu0 %461 }
 0x437   :  { %v464_v30 = vmax.f32 %v462_v50, 1e-30 }
 0x439   :  { %2849 = vrcp.f32 %v464_v30 }
 0x43a   :  { %v459_v31 = vpop.xlane.xlu1 %458 }
 0x43b   :  { %v463_v10 = vmax.f32 %v459_v31, 1e-30  ;;  %v2401_v31 = vld [vmem:[%s3859_s6] ss:$0 sm:$0xff] }
 0x43d   :  { %2851 = vrcp.f32 %v463_v10 }
 0x443   :  { %v794_v24 = vpop.xlane.xlu0 %793  ;;  %v2850_v37 = vpop.eup %2849 }
 0x444   :  { %v798_v33 = vmax.f32 %v794_v24, 1e-30  ;;  %v797_v36 = vpop.xlane.xlu1 %796  ;;  %v468_v53 = vmul.f32 %v2850_v37, %v3446_v45  ;;  %v1106_v45 = vld [vmem:[%s3861_s8 + $0x8] sm:$0xff] }
 0x445   :  { %v799_v62 = vmax.f32 %v797_v36, 1e-30 }
 0x446   :  { %2853 = vrcp.f32 %v798_v33 }
 0x447   :  { %v2852_v38 = vpop.eup %2851  ;;  %2855 = vrcp.f32 %v799_v62 }
 0x448   :  { %v467_v39 = vmul.f32 %v2852_v38, %v455_v32  ;;  %v1105_v32 = vld [vmem:[%s3861_s8] sm:$0xff] }
 0x449   :  { %v2725_v0 = vpack.c.bf16 %v1106_v45, %v1105_v32 }
 0x44a   :  { %2572 = vmatprep.mubr.msk.f32.mxu0 %vm442_vm6, %v467_v39 }
 0x44b   :  { %2573 = vmatmul.mubr.msk.f32.vlgmr.msra.gmra.mrb[6].mxu0 %vm442_vm6, %v468_v53 }
 0x44c   :  { %2720 = vmatpush3.bf16.msra.mxu0 %v3225_v48  ;;  %v1107_v48 = vld [vmem:[%s3861_s8 + $0x10] sm:$0xff] }
 0x44d   :  { %2726 = vmatprep.subr.bf16.mxu0 %v2725_v0 }
 0x450   :  { %v2854_v61 = vpop.eup %2853 }
 0x451   :  { %v2856_v4 = vpop.eup %2855  ;;  %v802_v35 = vmul.f32 %v2854_v61, %v790_v6  ;;  %v1108_v6 = vld [vmem:[%s3861_s8 + $0x18] sm:$0xff]  ;;  %s2991_s8 = smov [#allocation8]  }
 0x452   :  { %v803_v28 = vmul.f32 %v2856_v4, %v791_v34  ;;  %v2729_v34 = vpack.c.bf16 %v1108_v6, %v1107_v48  ;;  %s2326_s28 = sshll.u32 %s2991_s8, 4  ;;  %s2327_s28 = int_to_ptr.vmem [resolvable:$true] %s2326_s28 }
 0x453   :  { %2586 = vmatprep.mubr.msk.f32.mxu0 %vm442_vm6, %v802_v35  ;;  %s2929_s29 = scalar_lea.vmem %s2327_s28, 32  ;;  %p2934_p11 = scmp.lt.s32.totalorder %s2327_s28, %s2327_s28 }
 0x454   :  { %2587 = vmatmul.mubr.msk.f32.vlgmr.msra.gmra.mrb[8].mxu0 %vm442_vm6, %v803_v28  ;;  %p2930_p10 = scmp.ne.s32.totalorder %s2327_s28, %s2929_s29  ;;  %p2935_p12 = scmp.lt.s32.totalorder %s2929_s29, %s2929_s29 }
 0x455   :  { %2728 = vmatpush3.bf16.msra.mxu0 %v2725_v0 }
 0x456   :  { %2730 = vmatprep.subr.bf16.mxu0 %v2729_v34  ;;  %p2936_p13 = por %p2935_p12, %p2934_p11 }
 0x458   :  { %p2937_p0 = pnand %p2936_p13, %p2930_p10 }
 0x459   :  { %2732 = vmatpush3.bf16.msra.mxu0 %v2729_v34 }
 0x45a   :  { %2741 = vmatprep.subr.bf16.mxu0 %v2983_v11 }
 0x4e1   :  { %v2581_v1 = vpop.f32.mrb[4].mxu1 }
 0x4e2   :  { %713 = vrot.lane.b32.xlu1 %v2581_v1, %s2987_s22  ;;  %v700_v5 = vpop.f32.mrb[5].mxu1 }
 0x4e3   :  { %711 = vrot.lane.b32.xlu0 %v700_v5, %s2987_s22 }
 0x4e8   :  { %v2595_v51 = vpop.f32.mrb[6].mxu1 }
 0x4e9   :  { %1060 = vrot.lane.b32.xlu0 %v2595_v51, %s2987_s22  ;;  %v1047_v26 = vpop.f32.mrb[7].mxu1 }
 0x4ea   :  { %1058 = vrot.lane.b32.xlu1 %v1047_v26, %s2987_s22 }
 0x51e   :  { %v2574_v40 = vpop.f32.mrb[6].mxu0 }
 0x51f   :  { %551 = vst.msk [vmem:[#allocation2 + $0x8] sm:$0xff] %vm442_vm6, %v2574_v40  ;;  %v541_v41 = vpop.f32.mrb[7].mxu0 }
 0x520   :  { %550 = vst.msk [vmem:[#allocation2] sm:$0xff] %vm442_vm6, %v541_v41 }
 0x527   :  { %v2588_v43 = vpop.f32.mrb[8].mxu0 }
 0x528   :  { %886 = vst.msk [vmem:[#allocation2 + $0x18] sm:$0xff] %vm442_vm6, %v2588_v43  ;;  %v876_v27 = vpop.f32.mrb[9].mxu0 }
 0x529   :  { %885 = vst.msk [vmem:[#allocation2 + $0x10] sm:$0xff] %vm442_vm6, %v876_v27 }
 0x554   :  { %v714_v50 = vpop.permute.xlu1 %713 }
 0x555   :  { %719 = vst.msk [vmem:[#allocation2 + $0x8] sm:$0xff] %vm717_vm9, %v714_v50  ;;  %v712_v30 = vpop.permute.xlu0 %711 }
 0x556   :  { %718 = vst.msk [vmem:[#allocation2] sm:$0xff] %vm717_vm9, %v712_v30 }
 0x55b   :  { %v1061_v10 = vpop.permute.xlu0 %1060 }
 0x55c   :  { %1065 = vst.msk [vmem:[#allocation2 + $0x18] sm:$0xff] %vm717_vm9, %v1061_v10  ;;  %v1059_v24 = vpop.permute.xlu1 %1058  ;;  %v1067_v33 = vld [vmem:[#allocation2 + $0x8] sm:$0xff] }
 0x55d   :  { %1064 = vst.msk [vmem:[#allocation2 + $0x10] sm:$0xff] %vm717_vm9, %v1059_v24  ;;  %v1066_v36 = vld [vmem:[#allocation2] sm:$0xff]  ;;  %v1078_v62 = vadd.f32 %v2401_v31, %v1067_v33 }
 0x55e   :  { %v1077_v37 = vadd.f32 %v2401_v31, %v1066_v36  ;;  %v1307_v33 = vld [vmem:[%s3863_s10] sm:$0x3]  ;;  %v3554_v36 = vstv %s2435_s21  ;;  %s1703_s10 = sld [smem:[#allocation6]] }
 0x55f   :  { %v1086_v38 = vmin.f32 %v1078_v62, 0.0  ;;  %vm1082_vm11 = vcmp.gt.f32.partialorder %v1078_v62, 0.0 }
 0x560   :  { %v1085_v39 = vmin.f32 %v1077_v37, 0.0  ;;  %vm1081_vm10 = vcmp.gt.f32.partialorder %v1077_v37, 0.0 }
 0x561   :  { %v1091_v53 = vmul.f32 1.442695, %v1086_v38  ;;  %v3562_v38 = vstv %s2437_s12 }
 0x562   :  { %v1089_v61 = vmul.f32 1.442695, %v1085_v39 }
 0x563   :  { %2857 = vpow2.f32 %v1091_v53  ;;  %v1069_v4 = vld [vmem:[#allocation2 + $0x18] sm:$0xff] }
 0x564   :  { %2859 = vpow2.f32 %v1089_v61  ;;  %v1068_v35 = vld [vmem:[#allocation2 + $0x10] sm:$0xff]  ;;  %v1080_v28 = vadd.f32 %v2401_v31, %v1069_v4  ;;  %v1882_v4 = vmul.f32 %v3153_v18, %v3562_v38 }
 0x565   :  { %v1079_v32 = vadd.f32 %v2401_v31, %v1068_v35  ;;  %v1873_v35 = vmul.f32 %v3138_v15, %v3554_v36 }
 0x566   :  { %v1088_v45 = vmin.f32 %v1080_v28, 0.0  ;;  %vm1084_vm13 = vcmp.gt.f32.partialorder %v1080_v28, 0.0 }
 0x567   :  { %v1087_v48 = vmin.f32 %v1079_v32, 0.0  ;;  %vm1083_vm12 = vcmp.gt.f32.partialorder %v1079_v32, 0.0 }
 0x568   :  { %v1095_v0 = vmul.f32 1.442695, %v1088_v45 }
 0x569   :  { %v1093_v6 = vmul.f32 1.442695, %v1087_v48 }
 0x56a   :  { %2861 = vpow2.f32 %v1095_v0 }
 0x56b   :  { %2863 = vpow2.f32 %v1093_v6  ;;  %v1883_v6 = vmul.f32 %v3158_v19, %v3562_v38 }
 0x56d   :  { %v2858_v34 = vpop.eup %2857 }
 0x56e   :  { %v2860_v1 = vpop.eup %2859  ;;  %v2403_v5 = vadd.f32 -1.0, %v2858_v34 }
 0x56f   :  { %v2402_v51 = vadd.f32 -1.0, %v2860_v1 }
 0x570   :  { %v1102_v7 = vsel %vm1082_vm11, %v1078_v62, %v2403_v5  ;;  %v3556_v62 = vstv %s2436_s7 }
 0x571   :  { %v1101_v26 = vsel %vm1081_vm10, %v1077_v37, %v2402_v51  ;;  %v1872_v37 = vmul.f32 %v3133_v14, %v3554_v36  ;;  %v1876_v42 = vmul.f32 %v3143_v16, %v3556_v62 }
 0x572   :  { %2604 = vmatprep.mubr.msk.f32.mxu0 %vm224_vm2, %v1101_v26 }
 0x573   :  { %2605 = vmatmul.mubr.msk.f32.vlgmr.msra.gmra.mrb[10].mxu0 %vm224_vm2, %v1102_v7  ;;  %v1878_v61 = vadd.f32 %v1876_v42, %v1872_v37 }
 0x574   :  { %v2862_v44 = vpop.eup %2861 }
 0x575   :  { %v2864_v8 = vpop.eup %2863  ;;  %v2405_v46 = vadd.f32 -1.0, %v2862_v44  ;;  %v1884_v45 = vadd.f32 %v1882_v4, %v1878_v61  ;;  %v3581_v44 = vstv %s1703_s10 }
 0x576   :  { %v2404_v22 = vadd.f32 -1.0, %v2864_v8  ;;  %v3583_v8 = vstv %s2430_s24  ;;  %v1706_v37 = vmul.f32 %v3138_v15, %v3581_v44 }
 0x577   :  { %v1104_v40 = vsel %vm1084_vm13, %v1080_v28, %v2405_v46  ;;  %v1877_v28 = vmul.f32 %v3148_v17, %v3556_v62  ;;  %v1710_v42 = vmul.f32 %v3148_v17, %v3583_v8 }
 0x578   :  { %v1103_v47 = vsel %vm1083_vm12, %v1079_v32, %v2404_v22  ;;  %v3570_v32 = vstv %s2438_s4 }
 0x579   :  { %2607 = vmatprep.mubr.msk.f32.mxu0 %vm224_vm2, %v1103_v47  ;;  %v1888_v48 = vmul.f32 %v3165_v21, %v3570_v32  ;;  %v1879_v0 = vadd.f32 %v1877_v28, %v1873_v35  ;;  %v1889_v26 = vmul.f32 %v3184_v29, %v3570_v32  ;;  %v1705_v47 = vmul.f32 %v3133_v14, %v3581_v44 }
 0x57a   :  { %2608 = vmatmul.mubr.msk.f32.gmra.mrb[12].mxu0 %vm224_vm2, %v1104_v40  ;;  %v1709_v40 = vmul.f32 %v3143_v16, %v3583_v8  ;;  %v1720_v14 = vstv %s2432_s23  ;;  %v1712_v4 = vadd.f32 %v1710_v42, %v1706_v37 }
 0x57b   :  { %2632 = vmatprep.mubr.msk.f32.mxu0 %vm2984_vm1, %v2985_v12  ;;  %v1890_v5 = vadd.f32 %v1888_v48, %v1884_v45  ;;  %v1885_v51 = vadd.f32 %v1883_v6, %v1879_v0  ;;  %v1721_v16 = vmul.f32 %v3165_v21, %v1720_v14  ;;  %v1722_v28 = vmul.f32 %v3184_v29, %v1720_v14 }
 0x57d   :  { %v1891_v7 = vadd.f32 %v1889_v26, %v1885_v51  ;;  %v1387_v51 = vmul.f32 %v3293_v56, %v3583_v8 }
 0x646   :  { %v3518_v41 = vpop.f32.mrb[10].mxu0 }
 0x647   :  { %v3520_v43 = vpop.f32.mrb[11].mxu0 }
 0x648   :  { %v2820_v27 = vpack.i.bf16 %v3518_v41, %v3520_v43  ;;  %v2742_v50 = vpack.c.bf16 %v3518_v41, %v3520_v43  ;;  %2618 = vmatprep.mubr.msk.f32.mxu1 %vm224_vm2, %v3520_v43 }
 0x649   :  { %2619 = vmatmul.mubr.msk.f32.vlgmr.msra.gmra.mrb[8].mxu1 %vm224_vm2, %v3518_v41 }
 0x64a   :  { %2744 = vmatpush3.bf16.xpose.msk.msra.mxu0 %vm3202_vm3, %v2742_v50  ;;  %2750 = vmatprep.subr.bf16.mxu1 %v2742_v50 }
 0x64b   :  { %2752 = vmatpush3.bf16.msra.mxu1 %v2742_v50  ;;  %2745 = vmatprep.subr.bf16.mxu0 %v2983_v11  ;;  %v3590_v50 = vstv %s2431_s2 }
 0x64c   :  { %v1716_v35 = vmul.f32 %v3158_v19, %v3590_v50  ;;  %v1393_v23 = vmul.f32 %v3313_v3, %v3590_v50 }
 0x64d   :  { %v3533_v30 = vpop.f32.mrb[12].mxu0 }
 0x64e   :  { %v3535_v31 = vpop.f32.mrb[13].mxu0 }
 0x64f   :  { %v2815_v10 = vpack.i.bf16 %v3533_v30, %v3535_v31  ;;  %v3541_v24 = vpack.c.bf16 %v3533_v30, %v3535_v31  ;;  %2621 = vmatprep.mubr.msk.f32.mxu1 %vm224_vm2, %v3535_v31 }
 0x650   :  { %2622 = vmatmul.mubr.msk.f32.gmra.mrb[10].mxu1 %vm224_vm2, %v3533_v30 }
 0x652   :  { %2748 = vmatpush3.bf16.xpose.msk.msra.mxu0 %vm3202_vm3, %v3541_v24  ;;  %vm2140_vm3 = vcmask 1040384  }
 0x659   :  { %2633 = vmatmul.mubr.msk.f32.vlgmr.msra.gmra.mrb[14].mxu0 %vm224_vm2, %v1307_v33  ;;  %v1715_v33 = vmul.f32 %v3153_v18, %v3590_v50  ;;  %v1718_v18 = vadd.f32 %v1716_v35, %v1712_v4 }
 0x65b   :  { %v1724_v15 = vadd.f32 %v1722_v28, %v1718_v18 }
 0x71c   :  { %v2620_v39 = vpop.f32.mrb[8].mxu1 }
 0x71d   :  { %v1288_v53 = vpop.f32.mrb[9].mxu1 }
 0x723   :  { %v2623_v34 = vpop.f32.mrb[10].mxu1 }
 0x724   :  { %1897 = vperm.xlu0 %2810, %v2623_v34   ;;  %v1298_v1 = vpop.f32.mrb[11].mxu1 }
 0x725   :  { %1893 = vperm.xlu1 %2809, %v1298_v1  }
 0x728   :  { %2811 = vset.pattern.permute.xlu0 %v2988_v2 }
 0x729   :  { %1405 = vperm.xlu0 %2811, %v1288_v53   ;;  %1904 = vrot.lane.b32.xlu1 %v1890_v5, %s2987_s22 }
 0x72a   :  { %2812 = vset.pattern.permute.xlu1 %v2988_v2  ;;  %v1711_v2 = vadd.f32 %v1709_v40, %v1705_v47 }
 0x72c   :  { %v1377_v46 = vpop.f32.mrb[14].mxu0  ;;  %v1717_v61 = vadd.f32 %v1715_v33, %v1711_v2  ;;  %v1399_v2 = vmul.f32 %v3332_v9, %v1720_v14 }
 0x72d   :  { %1732 = vperm.xlu0 %2811, %v2623_v34   ;;  %1906 = vrot.lane.b32.xlu1 %v1891_v7, %s2987_s22  ;;  %v2634_v22 = vpop.f32.mrb[15].mxu0  ;;  %v3608_v21 = vrot.slane %v1377_v46, %v584_v25  ;;  %v1416_v29 = vrot.slane %v1377_v46, %v430_v58  ;;  %v1383_v25 = vmul.f32 %v3581_v44, %v3288_v55 }
 0x72f   :  { %v1389_v47 = vadd.f32 %v1387_v51, %v1383_v25 }
 0x731   :  { %2814 = vset.pattern.permute.xlu0 %v2986_v13  ;;  %1410 = vperm.xlu1 %2812, %v2620_v39   ;;  %v1395_v40 = vadd.f32 %v1393_v23, %v1389_v47 }
 0x732   :  { %1563 = vperm.xlu0 %2814, %v2620_v39   ;;  %v1723_v39 = vadd.f32 %v1721_v16, %v1717_v61 }
 0x733   :  { %v1401_v4 = vadd.f32 %v1399_v2, %v1395_v40  ;;  %v1539_v2 = vmul.f32 %v3554_v36, %v3277_v49 }
 0x735   :  { %1727 = vperm.xlu1 %2812, %v1298_v1  }
 0x739   :  { %2813 = vset.pattern.permute.xlu1 %v2986_v13 }
 0x73a   :  { %1559 = vperm.xlu1 %2813, %v1288_v53  }
 0x73e   :  { %1739 = vrot.lane.b32.xlu1 %v1723_v39, %s2987_s22 }
 0x742   :  { %1741 = vrot.lane.b32.xlu1 %v1724_v15, %s2987_s22 }
 0x7a3   :  { %v1898_v45 = vpop.permute.xlu0 %1897 }
 0x7a4   :  { %v1894_v17 = vpop.permute.xlu1 %1893  ;;  %v1901_v19 = vadd.f32 %v1898_v45, %v3608_v21 }
 0x7a5   :  { %v1900_v33 = vadd.f32 %v1894_v17, %v3608_v21  ;;  %v1388_v17 = vmul.f32 %v3282_v52, %v3583_v8 }
 0x7a8   :  { %v1905_v48 = vpop.permute.xlu1 %1904  ;;  %v1406_v26 = vpop.permute.xlu0 %1405 }
 0x7a9   :  { %v1910_v61 = vadd.f32 %v1905_v48, %v1900_v33  ;;  %v1417_v35 = vadd.f32 %v1416_v29, %v1406_v26  ;;  %v1549_v33 = vmul.f32 %v3303_v63, %v3562_v38 }
 0x7ab   :  { %v1912_v18 = vmul.f32 0.2, %v1910_v61  ;;  %v1419_v15 = vadd.f32 %v1417_v35, %v1401_v4 }
 0x7ac   :  { %v1907_v13 = vpop.permute.xlu1 %1906  ;;  %v1733_v58 = vpop.permute.xlu0 %1732 }
 0x7ad   :  { %v1911_v53 = vadd.f32 %v1907_v13, %v1901_v19  ;;  %v1736_v37 = vadd.f32 %v1733_v58, %v1416_v29  ;;  %v1914_v45 = vmax.f32 %v1910_v61, %v1912_v18  ;;  %v1421_v19 = vmul.f32 0.2, %v1419_v15 }
 0x7ae   :  { %v1384_v13 = vmul.f32 %v3581_v44, %v3277_v49  ;;  %v1538_v49 = vmul.f32 %v3554_v36, %v3288_v55 }
 0x7af   :  { %v1913_v0 = vmul.f32 0.2, %v1911_v53 }
 0x7b0   :  { %v1411_v6 = vpop.permute.xlu1 %1410  ;;  %v1390_v48 = vadd.f32 %v1388_v17, %v1384_v13 }
 0x7b1   :  { %v1915_v34 = vmax.f32 %v1911_v53, %v1913_v0  ;;  %v1394_v53 = vmul.f32 %v3303_v63, %v3590_v50  ;;  %v1423_v0 = vmax.f32 %v1419_v15, %v1421_v19  ;;  %v1418_v44 = vadd.f32 %v1416_v29, %v1411_v6  ;;  %v1564_v61 = vpop.permute.xlu0 %1563 }
 0x7b2   :  { %v1543_v6 = vmul.f32 %v3282_v52, %v3556_v62  ;;  %v1542_v52 = vmul.f32 %v3293_v56, %v3556_v62  ;;  %v1554_v56 = vmul.f32 %v3332_v9, %v3570_v32 }
 0x7b3   :  { %1920 = vrot.lane.b32.xlu1 %v1915_v34, %s2989_s19  ;;  %v1396_v34 = vadd.f32 %v1394_v53, %v1390_v48  ;;  %v1425_v25 = vsel %vm87_vm5, %v1423_v0, -1e+30 }
 0x7b4   :  { %v1728_v1 = vpop.permute.xlu1 %1727  ;;  %v1427_v51 = vsel %vm442_vm6, %v1425_v25, -inf }
 0x7b5   :  { %v1735_v5 = vadd.f32 %v1728_v1, %v1416_v29  ;;  %v1400_v1 = vmul.f32 %v3324_v20, %v1720_v14  ;;  %v1545_v29 = vadd.f32 %v1543_v6, %v1539_v2 }
 0x7b7   :  { %v1402_v26 = vadd.f32 %v1400_v1, %v1396_v34 }
 0x7b9   :  { %v1560_v7 = vpop.permute.xlu1 %1559 }
 0x7ba   :  { %v3619_v22 = vadd.f32 %v3608_v21, %v1560_v7  ;;  %v1420_v7 = vadd.f32 %v1418_v44, %v1402_v26 }
 0x7bc   :  { %v1422_v8 = vmul.f32 0.2, %v1420_v7 }
 0x7bd   :  { %v1740_v46 = vpop.permute.xlu1 %1739 }
 0x7be   :  { %v1424_v47 = vmax.f32 %v1420_v7, %v1422_v8  ;;  %v1745_v58 = vadd.f32 %v1740_v46, %v1735_v5  ;;  %v1571_v46 = vadd.f32 %v3608_v21, %v1564_v61  ;;  %v1544_v21 = vadd.f32 %v1542_v52, %v1538_v49 }
 0x7c0   :  { %v1426_v23 = vsel %vm88_vm4, %v1424_v47, -1e+30  ;;  %v1747_v40 = vmul.f32 0.2, %v1745_v58 }
 0x7c1   :  { %v1742_v42 = vpop.permute.xlu1 %1741  ;;  %v1430_v50 = vsel %vm442_vm6, %v1426_v23, -inf }
 0x7c2   :  { %v1746_v16 = vadd.f32 %v1742_v42, %v1736_v37  ;;  %v1749_v14 = vmax.f32 %v1745_v58, %v1747_v40  ;;  %v1551_v37 = vadd.f32 %v1549_v33, %v1545_v29  ;;  %v1555_v42 = vmul.f32 %v3324_v20, %v3570_v32 }
 0x7c4   :  { %v1748_v39 = vmul.f32 0.2, %v1746_v16  ;;  %v1557_v5 = vadd.f32 %v1555_v42, %v1551_v37 }
 0x7c6   :  { %v1750_v28 = vmax.f32 %v1746_v16, %v1748_v39  ;;  %v1573_v16 = vadd.f32 %v1571_v46, %v1557_v5 }
 0x7c8   :  { %1755 = vrot.lane.b32.xlu0 %v1750_v28, %s2989_s19  ;;  %v1575_v4 = vmul.f32 0.2, %v1573_v16  ;;  %v1548_v28 = vmul.f32 %v3313_v3, %v3562_v38 }
 0x7ca   :  { %v1577_v35 = vmax.f32 %v1573_v16, %v1575_v4  ;;  %v1550_v55 = vadd.f32 %v1548_v28, %v1544_v21 }
 0x7cc   :  { %1918 = vrot.lane.b32.xlu0 %v1914_v45, %s2989_s19  ;;  %v1579_v20 = vsel %vm88_vm4, %v1577_v35, -1e+30  ;;  %v1556_v36 = vadd.f32 %v1554_v56, %v1550_v55 }
 0x7cd   :  { %v1583_v15 = vsel %vm442_vm6, %v1579_v20, -inf }
 0x7ce   :  { %v1572_v62 = vadd.f32 %v3619_v22, %v1556_v36 }
 0x7d0   :  { %v1574_v45 = vmul.f32 0.2, %v1572_v62 }
 0x7d2   :  { %v1576_v3 = vmax.f32 %v1572_v62, %v1574_v45 }
 0x7d4   :  { %v1578_v32 = vsel %vm87_vm5, %v1576_v3, -1e+30 }
 0x7d5   :  { %v1580_v22 = vsel %vm442_vm6, %v1578_v32, -inf }
 0x7d7   :  { %1428 = vmax.xlane.f32.xlu1 %v1427_v51 }
 0x7eb   :  { %1431 = vmax.xlane.f32.xlu0 %v1430_v50 }
 0x801   :  { %1753 = vrot.lane.b32.xlu0 %v1749_v14, %s2989_s19 }
 0x825   :  { %v1921_v39 = vpop.permute.xlu1 %1920 }
 0x826   :  { %v1925_v63 = vsel %vm93_vm8, %v1921_v39, -1e+30 }
 0x827   :  { %v1929_v18 = vsel %vm442_vm6, %v1925_v63, -inf }
 0x828   :  { %1930 = vmax.xlane.f32.xlu0 %v1929_v18 }
 0x82c   :  { %1584 = vmax.xlane.f32.xlu0 %v1583_v15 }
 0x83a   :  { %v1756_v19 = vpop.permute.xlu0 %1755 }
 0x83b   :  { %v3667_v13 = vsel %vm93_vm8, %v1756_v19, -1e+30 }
 0x83c   :  { %v1764_v17 = vsel %vm442_vm6, %v3667_v13, -inf }
 0x83d   :  { %1765 = vmax.xlane.f32.xlu0 %v1764_v17 }
 0x83e   :  { %v1919_v38 = vpop.permute.xlu0 %1918 }
 0x83f   :  { %v1924_v48 = vsel %vm92_vm7, %v1919_v38, -1e+30 }
 0x840   :  { %v1926_v9 = vsel %vm442_vm6, %v1924_v48, -inf }
 0x841   :  { %1927 = vmax.xlane.f32.xlu1 %v1926_v9 }
 0x845   :  { %1581 = vmax.xlane.f32.xlu1 %v1580_v22 }
 0x864   :  { %v1429_v53 = vpop.xlane.xlu1 %1428 }
 0x865   :  { %v1433_v0 = vsub.f32 %v1425_v25, %v1429_v53 }
 0x867   :  { %v1435_v34 = vmul.f32 1.442695, %v1433_v0 }
 0x869   :  { %2865 = vpow2.f32 %v1435_v34 }
 0x873   :  { %v2866_v44 = vpop.eup %2865 }
 0x874   :  { %v3682_v50 = vsel %vm87_vm5, %v2866_v44, 0.0 }
 0x875   :  { %v1441_v25 = vsel %vm442_vm6, %v3682_v50, 0.0 }
 0x878   :  { %v1432_v1 = vpop.xlane.xlu0 %1431 }
 0x879   :  { %v1434_v51 = vsub.f32 %v1426_v23, %v1432_v1 }
 0x87b   :  { %v1437_v26 = vmul.f32 1.442695, %v1434_v51 }
 0x87c   :  { %v1754_v7 = vpop.permute.xlu0 %1753 }
 0x87d   :  { %2867 = vpow2.f32 %v1437_v26  ;;  %v1759_v8 = vsel %vm92_vm7, %v1754_v7, -1e+30 }
 0x87e   :  { %v1761_v47 = vsel %vm442_vm6, %v1759_v8, -inf }
 0x87f   :  { %1762 = vmax.xlane.f32.xlu1 %v1761_v47 }
 0x883   :  { %1442 = vadd.xlane.f32.xlu1 %v1441_v25 }
 0x887   :  { %v2868_v58 = vpop.eup %2867 }
 0x888   :  { %v3688_v23 = vsel %vm88_vm4, %v2868_v58, 0.0 }
 0x889   :  { %v1444_v40 = vsel %vm442_vm6, %v3688_v23, 0.0 }
 0x88a   :  { %1445 = vadd.xlane.f32.xlu0 %v1444_v40 }
 0x8b5   :  { %v1931_v14 = vpop.xlane.xlu0 %1930 }
 0x8b6   :  { %v1933_v2 = vsub.f32 %v1925_v63, %v1931_v14 }
 0x8b8   :  { %v1936_v6 = vmul.f32 1.442695, %v1933_v2 }
 0x8b9   :  { %v1585_v29 = vpop.xlane.xlu0 %1584 }
 0x8ba   :  { %v1587_v33 = vsub.f32 %v1579_v20, %v1585_v29  ;;  %2869 = vpow2.f32 %v1936_v6 }
 0x8bc   :  { %v1590_v37 = vmul.f32 1.442695, %v1587_v33 }
 0x8be   :  { %2871 = vpow2.f32 %v1590_v37 }
 0x8c4   :  { %v2870_v42 = vpop.eup %2869 }
 0x8c5   :  { %v3700_v16 = vsel %vm93_vm8, %v2870_v42, 0.0 }
 0x8c6   :  { %v1943_v35 = vsel %vm442_vm6, %v3700_v16, 0.0 }
 0x8c8   :  { %v2872_v61 = vpop.eup %2871 }
 0x8c9   :  { %v3694_v5 = vsel %vm88_vm4, %v2872_v61, 0.0  ;;  %vm2157_vm4 = vcmask 523264  }
 0x8ca   :  { %v1597_v46 = vsel %vm442_vm6, %v3694_v5, 0.0  ;;  %v1766_v56 = vpop.xlane.xlu0 %1765 }
 0x8cb   :  { %1598 = vadd.xlane.f32.xlu0 %v1597_v46  ;;  %v1768_v60 = vsub.f32 %v3667_v13, %v1766_v56 }
 0x8cd   :  { %v1771_v36 = vmul.f32 1.442695, %v1768_v60  ;;  %v2146_v60 = vld [vmem:[%s3866_s13 + $0x20] sm:$0xff] }
 0x8ce   :  { %v1928_v4 = vpop.xlane.xlu1 %1927 }
 0x8cf   :  { %v1932_v49 = vsub.f32 %v1924_v48, %v1928_v4  ;;  %1944 = vadd.xlane.f32.xlu0 %v1943_v35 }
 0x8d1   :  { %v1934_v52 = vmul.f32 1.442695, %v1932_v49 }
 0x8d2   :  { %v1582_v39 = vpop.xlane.xlu1 %1581 }
 0x8d3   :  { %v1586_v63 = vsub.f32 %v1578_v32, %v1582_v39  ;;  %2873 = vpow2.f32 %v1934_v52 }
 0x8d5   :  { %v1588_v59 = vmul.f32 1.442695, %v1586_v63 }
 0x8d7   :  { %2875 = vpow2.f32 %v1588_v59 }
 0x8d8   :  { %2877 = vpow2.f32 %v1771_v36  ;;  %v2147_v36 = vld [vmem:[%s3866_s13 + $0x28] sm:$0xff] }
 0x8dd   :  { %v2874_v18 = vpop.eup %2873 }
 0x8de   :  { %v3712_v15 = vsel %vm92_vm7, %v2874_v18, 0.0 }
 0x8df   :  { %v1940_v55 = vsel %vm442_vm6, %v3712_v15, 0.0 }
 0x8e1   :  { %v2876_v20 = vpop.eup %2875 }
 0x8e2   :  { %v3706_v21 = vsel %vm87_vm5, %v2876_v20, 0.0  ;;  %v2878_v62 = vpop.eup %2877  ;;  %vm2316_vm5 = vcmask 517120  }
 0x8e3   :  { %v1594_v28 = vsel %vm442_vm6, %v3706_v21, 0.0  ;;  %v3727_v45 = vsel %vm93_vm8, %v2878_v62, 0.0  ;;  %v2772_v62 = vpack.c.bf16 %v2147_v36, %v2146_v60 }
 0x8e4   :  { %1595 = vadd.xlane.f32.xlu1 %v1594_v28  ;;  %v1778_v41 = vsel %vm442_vm6, %v3727_v45, 0.0  ;;  %v2144_v28 = vld [vmem:[%s3866_s13 + $0x10] sm:$0xff] }
 0x8e5   :  { %2821 = vrot.lane.b32.xlu0 %v2820_v27, %s2989_s19 }
 0x8e8   :  { %1941 = vadd.xlane.f32.xlu1 %v1940_v55  ;;  %v2145_v55 = vld [vmem:[%s3866_s13 + $0x18] sm:$0xff] }
 0x8e9   :  { %v2769_v56 = vpack.c.bf16 %v2145_v55, %v2144_v28 }
 0x8f9   :  { %2816 = vrot.lane.b32.xlu1 %v2815_v10, %s2989_s19 }
 0x904   :  { %1779 = vadd.xlane.f32.xlu0 %v1778_v41 }
 0x90c   :  { %v1763_v43 = vpop.xlane.xlu1 %1762 }
 0x90d   :  { %v1767_v27 = vsub.f32 %v1759_v8, %v1763_v43 }
 0x90f   :  { %v1769_v19 = vmul.f32 1.442695, %v1767_v27 }
 0x910   :  { %v1443_v13 = vpop.xlane.xlu1 %1442 }
 0x911   :  { %2879 = vpow2.f32 %v1769_v19  ;;  %v1447_v17 = vmax.f32 %v1443_v13, 1e-30  ;;  %v2441_v13 = vld [vmem:[%s3864_s11] ss:$0 sm:$0xff] }
 0x913   :  { %2881 = vrcp.f32 %v1447_v17 }
 0x917   :  { %v1446_v3 = vpop.xlane.xlu0 %1445 }
 0x918   :  { %v1448_v38 = vmax.f32 %v1446_v3, 1e-30 }
 0x91a   :  { %2883 = vrcp.f32 %v1448_v38 }
 0x91b   :  { %v2880_v30 = vpop.eup %2879 }
 0x91c   :  { %v1773_v57 = vsel %vm92_vm7, %v2880_v30, 0.0 }
 0x91d   :  { %v2882_v31 = vpop.eup %2881  ;;  %v1775_v10 = vsel %vm442_vm6, %v1773_v57, 0.0 }
 0x91e   :  { %1776 = vadd.xlane.f32.xlu1 %v1775_v10  ;;  %v1451_v48 = vmul.f32 %v2882_v31, %v3682_v50 }
 0x920   :  { %2639 = vmatprep.mubr.msk.f32.mxu1 %vm442_vm6, %v1451_v48 }
 0x924   :  { %v2884_v9 = vpop.eup %2883 }
 0x925   :  { %v1452_v32 = vmul.f32 %v2884_v9, %v3688_v23 }
 0x927   :  { %2640 = vmatmul.mubr.msk.f32.vlgmr.msra.gmra.mrb[12].mxu1 %vm442_vm6, %v1452_v32 }
 0x958   :  { %v1599_v22 = vpop.xlane.xlu0 %1598 }
 0x959   :  { %v1601_v51 = vmax.f32 %v1599_v22, 1e-30 }
 0x95b   :  { %2885 = vrcp.f32 %v1601_v51 }
 0x95c   :  { %v1945_v53 = vpop.xlane.xlu0 %1944 }
 0x95d   :  { %v1947_v7 = vmax.f32 %v1945_v53, 1e-30 }
 0x960   :  { %v2822_v0 = vpop.permute.xlu0 %2821 }
 0x961   :  { %v2824_v34 = vunpack.i.h.bf16 %v2822_v0  ;;  %v2823_v1 = vunpack.i.l.bf16 %v2822_v0 }
 0x963   :  { %v2753_v54 = vpack.c.bf16 %v2824_v34, %v2823_v1 }
 0x965   :  { %2754 = vmatprep.subr.bf16.mxu1 %v2753_v54  ;;  %v2886_v40 = vpop.eup %2885 }
 0x966   :  { %2756 = vmatpush3.bf16.msra.mxu1 %v2753_v54  ;;  %v1605_v6 = vmul.f32 %v2886_v40, %v3694_v5 }
 0x967   :  { %2758 = vmatprep.subr.bf16.mxu1 %v3541_v24 }
 0x971   :  { %v1596_v26 = vpop.xlane.xlu1 %1595 }
 0x972   :  { %v1600_v44 = vmax.f32 %v1596_v26, 1e-30 }
 0x974   :  { %2887 = vrcp.f32 %v1600_v44 }
 0x975   :  { %v1942_v8 = vpop.xlane.xlu1 %1941  ;;  %2889 = vrcp.f32 %v1947_v7 }
 0x976   :  { %v1946_v47 = vmax.f32 %v1942_v8, 1e-30 }
 0x978   :  { %2891 = vrcp.f32 %v1946_v47 }
 0x979   :  { %v2817_v50 = vpop.permute.xlu1 %2816 }
 0x97a   :  { %v2819_v25 = vunpack.i.h.bf16 %v2817_v50  ;;  %v2818_v58 = vunpack.i.l.bf16 %v2817_v50 }
 0x97c   :  { %v2761_v23 = vpack.c.bf16 %v2819_v25, %v2818_v58 }
 0x97e   :  { %v2888_v14 = vpop.eup %2887  ;;  %2762 = vmatprep.subr.bf16.mxu0 %v2761_v23 }
 0x97f   :  { %2764 = vmatpush3.bf16.msra.mxu0 %v2761_v23  ;;  %v1604_v2 = vmul.f32 %v2888_v14, %v3706_v21  ;;  %v2890_v29 = vpop.eup %2889  ;;  %v2143_v21 = vld [vmem:[%s3866_s13 + $0x8] sm:$0xff] }
 0x980   :  { %2777 = vmatprep.subr.bf16.mxu0 %v2983_v11  ;;  %v1951_v42 = vmul.f32 %v2890_v29, %v3700_v16 }
 0x981   :  { %2646 = vmatprep.mubr.msk.f32.mxu1 %vm442_vm6, %v1604_v2 }
 0x982   :  { %v2892_v33 = vpop.eup %2891  ;;  %2647 = vmatmul.mubr.msk.f32.vlgmr.msra.gmra.mrb[14].mxu1 %vm442_vm6, %v1605_v6 }
 0x983   :  { %2760 = vmatpush3.bf16.msra.mxu1 %v3541_v24  ;;  %v1950_v37 = vmul.f32 %v2892_v33, %v3712_v15 }
 0x984   :  { %2765 = vmatprep.subr.bf16.mxu1 %v2983_v11 }
 0x985   :  { %2660 = vmatprep.mubr.msk.f32.mxu0 %vm442_vm6, %v1950_v37 }
 0x986   :  { %2661 = vmatmul.mubr.msk.f32.vlgmr.msra.gmra.mrb[16].mxu0 %vm442_vm6, %v1951_v42 }
 0x987   :  { %2690 = vmatprep.mubr.msk.f32.mxu0 %vm2984_vm1, %v2985_v12 }
 0x991   :  { %v1780_v61 = vpop.xlane.xlu0 %1779 }
 0x992   :  { %v1782_v5 = vmax.f32 %v1780_v61, 1e-30 }
 0x994   :  { %2893 = vrcp.f32 %v1782_v5 }
 0x99e   :  { %v2894_v24 = vpop.eup %2893 }
 0x99f   :  { %v1786_v16 = vmul.f32 %v2894_v24, %v3727_v45  ;;  %v2149_v24 = vld [vmem:[%s3866_s13 + $0x38] sm:$0xff] }
 0x9ab   :  { %v1777_v46 = vpop.xlane.xlu1 %1776 }
 0x9ac   :  { %v1781_v4 = vmax.f32 %v1777_v46, 1e-30 }
 0x9ae   :  { %2895 = vrcp.f32 %v1781_v4  ;;  %v2148_v4 = vld [vmem:[%s3866_s13 + $0x30] sm:$0xff] }
 0x9b8   :  { %v2896_v35 = vpop.eup %2895 }
 0x9b9   :  { %v1785_v49 = vmul.f32 %v2896_v35, %v1773_v57 }
 0x9bb   :  { %2653 = vmatprep.mubr.msk.f32.mxu1 %vm442_vm6, %v1785_v49 }
 0x9bc   :  { %2654 = vmatmul.mubr.msk.f32.vlgmr.msra.gmra.mrb[16].mxu1 %vm442_vm6, %v1786_v16 }
 0x9bd   :  { %2679 = vmatprep.mubr.msk.f32.mxu1 %vm2984_vm1, %v2985_v12  ;;  %v2142_v12 = vld [vmem:[%s3866_s13] sm:$0xff]  ;;  %s2990_s13 = smov 32  }
 0x9be   :  { %v2766_v15 = vpack.c.bf16 %v2143_v21, %v2142_v12  ;;  %v2232_v12 = vld [vmem:[%s3868_s15] sm:$0xff]  ;;  %v2233_v21 = vld [vmem:[%s3868_s15 + $0x8] sm:$0xff] }
 0x9bf   :  { %v2778_v55 = vpack.c.bf16 %v2233_v21, %v2232_v12 }
 0x9c0   :  { %2767 = vmatpush3.bf16.msra.mxu1 %v2766_v15 }
 0x9c1   :  { %2768 = vmatprep.subr.bf16.mxu1 %v2983_v11  ;;  %2779 = vmatpush3.bf16.msra.mxu0 %v2778_v55 }
 0x9c2   :  { %2780 = vmatprep.subr.bf16.mxu0 %v2983_v11 }
 0x9c4   :  { %2770 = vmatpush3.bf16.msra.mxu1 %v2769_v56 }
 0x9c5   :  { %2771 = vmatprep.subr.bf16.mxu1 %v2983_v11 }
 0x9c8   :  { %2773 = vmatpush3.bf16.msra.mxu1 %v2772_v62 }
 0x9c9   :  { %2774 = vmatprep.subr.bf16.mxu1 %v2983_v11 }
 0x9fa   :  { %v2641_v52 = vpop.f32.mrb[12].mxu1 }
 0x9fb   :  { %1535 = vst.msk [vmem:[#allocation2 + $0x8] sm:$0xff] %vm442_vm6, %v2641_v52  ;;  %v1525_v39 = vpop.f32.mrb[13].mxu1  ;;  %v2775_v52 = vpack.c.bf16 %v2149_v24, %v2148_v4 }
 0x9fc   :  { %1534 = vst.msk [vmem:[#allocation2] sm:$0xff] %vm442_vm6, %v1525_v39 }
 0x9fd   :  { %2776 = vmatpush3.bf16.msra.mxu1 %v2775_v52 }
 0xa55   :  { %v2648_v63 = vpop.f32.mrb[14].mxu1 }
 0xa56   :  { %v1684_v59 = vpop.f32.mrb[15].mxu1 }
 0xa57   :  { %1695 = vrot.lane.b32.xlu1 %v1684_v59, %s2987_s22 }
 0xa59   :  { %v2662_v18 = vpop.f32.mrb[16].mxu0 }
 0xa5a   :  { %2043 = vrot.lane.b32.xlu0 %v2662_v18, %s2987_s22  ;;  %v2030_v20 = vpop.f32.mrb[17].mxu0 }
 0xa5b   :  { %2041 = vrot.lane.b32.xlu1 %v2030_v20, %s2987_s22 }
 0xa5f   :  { %1697 = vrot.lane.b32.xlu1 %v2648_v63, %s2987_s22 }
 0xa8f   :  { %v2655_v45 = vpop.f32.mrb[16].mxu1 }
 0xa90   :  { %1869 = vst.msk [vmem:[#allocation2 + $0x18] sm:$0xff] %vm442_vm6, %v2655_v45  ;;  %v1859_v41 = vpop.f32.mrb[17].mxu1 }
 0xa91   :  { %1868 = vst.msk [vmem:[#allocation2 + $0x10] sm:$0xff] %vm442_vm6, %v1859_v41 }
 0xac9   :  { %v1696_v43 = vpop.permute.xlu1 %1695 }
 0xaca   :  { %1701 = vst.msk [vmem:[#allocation2] sm:$0xff] %vm717_vm9, %v1696_v43 }
 0xacc   :  { %v2044_v27 = vpop.permute.xlu0 %2043 }
 0xacd   :  { %2048 = vst.msk [vmem:[#allocation2 + $0x18] sm:$0xff] %vm717_vm9, %v2044_v27  ;;  %v2042_v19 = vpop.permute.xlu1 %2041 }
 0xace   :  { %2047 = vst.msk [vmem:[#allocation2 + $0x10] sm:$0xff] %vm717_vm9, %v2042_v19 }
 0xad1   :  { %v1698_v17 = vpop.permute.xlu1 %1697  ;;  %v2049_v3 = vld [vmem:[#allocation2] sm:$0xff] }
 0xad2   :  { %1702 = vst.msk [vmem:[#allocation2 + $0x8] sm:$0xff] %vm717_vm9, %v1698_v17  ;;  %v2060_v38 = vadd.f32 %v2441_v13, %v2049_v3 }
 0xad4   :  { %v2052_v30 = vld [vmem:[#allocation2 + $0x18] sm:$0xff]  ;;  %v2068_v57 = vmin.f32 %v2060_v38, 0.0  ;;  %vm2064_vm0 = vcmp.gt.f32.partialorder %v2060_v38, 0.0 }
 0xad5   :  { %v2051_v31 = vld [vmem:[#allocation2 + $0x10] sm:$0xff]  ;;  %v2063_v10 = vadd.f32 %v2441_v13, %v2052_v30 }
 0xad6   :  { %v2062_v48 = vadd.f32 %v2441_v13, %v2051_v31  ;;  %v2072_v9 = vmul.f32 1.442695, %v2068_v57 }
 0xad7   :  { %v2071_v32 = vmin.f32 %v2063_v10, 0.0  ;;  %vm2067_vm14 = vcmp.gt.f32.partialorder %v2063_v10, 0.0 }
 0xad8   :  { %v2070_v22 = vmin.f32 %v2062_v48, 0.0  ;;  %2897 = vpow2.f32 %v2072_v9  ;;  %vm2066_vm15 = vcmp.gt.f32.partialorder %v2062_v48, 0.0 }
 0xad9   :  { %v2078_v53 = vmul.f32 1.442695, %v2071_v32  ;;  %v2050_v0 = vld [vmem:[#allocation2 + $0x8] sm:$0xff] }
 0xada   :  { %v2076_v34 = vmul.f32 1.442695, %v2070_v22  ;;  %v2061_v1 = vadd.f32 %v2441_v13, %v2050_v0 }
 0xadb   :  { %2899 = vpow2.f32 %v2078_v53 }
 0xadc   :  { %2901 = vpow2.f32 %v2076_v34  ;;  %v2069_v54 = vmin.f32 %v2061_v1, 0.0  ;;  %vm2065_vm1 = vcmp.gt.f32.partialorder %v2061_v1, 0.0 }
 0xade   :  { %v2074_v51 = vmul.f32 1.442695, %v2069_v54  ;;  %v2234_v54 = vld [vmem:[%s3868_s15 + $0x10] sm:$0xff] }
 0xae0   :  { %2903 = vpow2.f32 %v2074_v51  ;;  %v2235_v51 = vld [vmem:[%s3868_s15 + $0x18] sm:$0xff] }
 0xae2   :  { %v2898_v26 = vpop.eup %2897 }
 0xae3   :  { %v2442_v47 = vadd.f32 -1.0, %v2898_v26  ;;  %v2781_v26 = vpack.c.bf16 %v2235_v51, %v2234_v54 }
 0xae5   :  { %v2900_v44 = vpop.eup %2899  ;;  %v2084_v29 = vsel %vm2064_vm0, %v2060_v38, %v2442_v47  ;;  %2782 = vmatpush3.bf16.msra.mxu0 %v2781_v26 }
 0xae6   :  { %v2902_v7 = vpop.eup %2901  ;;  %v2445_v8 = vadd.f32 -1.0, %v2900_v44  ;;  %v2088_v46 = vsel %vm224_vm2, %v2084_v29, 0.0  ;;  %v2099_v35 = vsel %vm224_vm2, %v2084_v29, -inf  ;;  %v2446_v44 = vld [vmem:[%s3867_s14] ss:$0 sm:$0xff] }
 0xae7   :  { %v2444_v50 = vadd.f32 -1.0, %v2902_v7 }
 0xae8   :  { %v2087_v25 = vsel %vm2067_vm14, %v2063_v10, %v2445_v8 }
 0xae9   :  { %v2086_v58 = vsel %vm2066_vm15, %v2062_v48, %v2444_v50  ;;  %v2114_v23 = vsel %vm224_vm2, %v2087_v25, 0.0  ;;  %v2124_v40 = vsel %vm224_vm2, %v2087_v25, -inf }
 0xaea   :  { %v2904_v14 = vpop.eup %2903  ;;  %v2123_v2 = vsel %vm224_vm2, %v2086_v58, -inf  ;;  %v2113_v6 = vsel %vm224_vm2, %v2086_v58, 0.0 }
 0xaeb   :  { %v2125_v33 = vmax.f32 %v2123_v2, %v2124_v40  ;;  %v2443_v37 = vadd.f32 -1.0, %v2904_v14  ;;  %v2115_v42 = vadd.f32 %v2114_v23, %v2113_v6 }
 0xaed   :  { %v2126_v61 = vrot.slane %v2125_v33, 4  ;;  %v2085_v5 = vsel %vm2065_vm1, %v2061_v1, %v2443_v37  ;;  %v2116_v43 = vrot.slane %v2115_v42, 4 }
 0xaee   :  { %v2100_v49 = vsel %vm224_vm2, %v2085_v5, -inf  ;;  %v2089_v16 = vsel %vm224_vm2, %v2085_v5, 0.0 }
 0xaef   :  { %v2127_v39 = vmax.f32 %v2125_v33, %v2126_v61  ;;  %v2101_v63 = vmax.f32 %v2099_v35, %v2100_v49  ;;  %v2090_v59 = vadd.f32 %v2089_v16, %v2088_v46  ;;  %v2117_v27 = vadd.f32 %v2116_v43, %v2115_v42 }
 0xaf1   :  { %v2128_v18 = vrot.slane %v2127_v39, 2  ;;  %v2102_v20 = vrot.slane %v2101_v63, 4  ;;  %v2091_v19 = vrot.slane %v2090_v59, 4  ;;  %v2118_v13 = vrot.slane %v2117_v27, 2 }
 0xaf3   :  { %v2129_v28 = vmax.f32 %v2127_v39, %v2128_v18  ;;  %v2103_v15 = vmax.f32 %v2101_v63, %v2102_v20  ;;  %v2092_v17 = vadd.f32 %v2091_v19, %v2090_v59  ;;  %v2119_v3 = vadd.f32 %v2118_v13, %v2117_v27 }
 0xaf5   :  { %v2130_v56 = vrot.slane %v2129_v28, 1  ;;  %v2104_v60 = vrot.slane %v2103_v15, 2  ;;  %v2093_v38 = vrot.slane %v2092_v17, 2  ;;  %v2120_v30 = vrot.slane %v2119_v3, 1 }
 0xaf7   :  { %v2131_v36 = vmax.f32 %v2129_v28, %v2130_v56  ;;  %v2105_v62 = vmax.f32 %v2103_v15, %v2104_v60  ;;  %v2094_v57 = vadd.f32 %v2093_v38, %v2092_v17  ;;  %v2121_v31 = vadd.f32 %v2120_v30, %v2119_v3 }
 0xaf9   :  { %2133 = vrot.lane.b32.xlu0 %v2131_v36, %s2990_s13  ;;  %v2106_v45 = vrot.slane %v2105_v62, 1  ;;  %v2095_v10 = vrot.slane %v2094_v57, 1  ;;  %v2122_v48 = vmul.f32 0.0625, %v2121_v31 }
 0xafb   :  { %v2107_v41 = vmax.f32 %v2105_v62, %v2106_v45  ;;  %v2096_v9 = vadd.f32 %v2095_v10, %v2094_v57 }
 0xafd   :  { %2109 = vrot.lane.b32.xlu1 %v2107_v41, %s2990_s13  ;;  %v2098_v22 = vmul.f32 0.0625, %v2096_v9 }
 0xb6b   :  { %v2134_v32 = vpop.permute.xlu0 %2133 }
 0xb6c   :  { %v2136_v11 = vsel %vm224_vm2, %v2122_v48, %v2134_v32 }
 0xb6d   :  { %v2138_v53 = vrot.slane %v2136_v11, 7 }
 0xb6f   :  { %v2110_v0 = vpop.permute.xlu1 %2109 }
 0xb70   :  { %v2112_v34 = vsel %vm224_vm2, %v2098_v22, %v2110_v0 }
 0xb71   :  { %v2141_v1 = vsel %vm2140_vm3, %v2112_v34, %v2138_v53 }
 0xb72   :  { %2680 = vmatmul.mubr.msk.f32.vlgmr.msra.gmra.mrb[18].mxu1 %vm2157_vm4, %v2141_v1  ;;  %2317 = vst.msk [vmem:[#allocation8] sm:$0x3] %vm2316_vm5, %v2141_v1 }
 0xc45   :  { %v2227_v7 = vpop.f32.mrb[18].mxu1 }
 0xc46   :  { %v2228_v8 = vadd.f32 %v2446_v44, %v2227_v7  ;;  %v2681_v47 = vpop.f32.mrb[19].mxu1 }
 0xc48   :  { %v2231_v50 = vmax.f32 %v2228_v8, 0.0 }
 0xc4a   :  { %2691 = vmatmul.mubr.msk.f32.vlgmr.msra.gmra.mrb[18].mxu0 %vm224_vm2, %v2231_v50 }
 0xc4b   :  { %2940 = shalt.err (!%p2937_p0)
}
 0xc4c   :  { %s2941_s14 = scalar_lea.hbm %s3870_s17, 32 }
 0xc4d   :  { %p2942_p1 = scmp.ne.s32.totalorder %s3870_s17, %s2941_s14  ;;  %p2945_p2 = scmp.lt.u32.totalorder %s2941_s14, %s3870_s17 }
 0xc4f   :  { %p2947_p3 = pnand %p2945_p2, %p2942_p1 }
 0xc51   :  { %2950 = shalt.err (!%p2947_p3)
}
 0xc52   :  { %2329 = dma.vmem_to_hbm [thread:$0]  %s2327_s28, 32, %s3870_s17, [#allocation4]   ;;  %v2448_v25 = vld [vmem:[%s3869_s16] ss:$0 sm:$0xff]  ;;  %vm2318_vm2 = vcmask 17408  }
 0xc53   :  { %s2992_s6 = smov [#allocation9]  }
 0xc54   :  { %s2336_s20 = sshll.u32 %s2992_s6, 4  ;;  %s2337_s20 = int_to_ptr.vmem [resolvable:$true] %s2336_s20 }
 0xc55   :  { %s2951_s21 = scalar_lea.vmem %s2337_s20, 32  ;;  %p2956_p5 = scmp.lt.s32.totalorder %s2337_s20, %s2337_s20 }
 0xc56   :  { %p2952_p4 = scmp.ne.s32.totalorder %s2337_s20, %s2951_s21  ;;  %p2957_p6 = scmp.lt.s32.totalorder %s2951_s21, %s2951_s21 }
 0xc58   :  { %p2958_p7 = por %p2957_p6, %p2956_p5 }
 0xc5a   :  { %p2959_p8 = pnand %p2958_p7, %p2952_p4 }
 0xd1d   :  { %v2312_v58 = vpop.f32.mrb[18].mxu0 }
 0xd1e   :  { %v2313_v23 = vadd.f32 %v2448_v25, %v2312_v58  ;;  %v2692_v40 = vpop.f32.mrb[19].mxu0 }
 0xd20   :  { %2319 = vst.msk [vmem:[#allocation9] sm:$0x3] %vm2318_vm2, %v2313_v23 }
 0xd21   :  { %2962 = shalt.err (!%p2959_p8)
}
 0xd22   :  { %s2963_s12 = scalar_lea.hbm %s3871_s18, 32 }
 0xd23   :  { %p2964_p9 = scmp.ne.s32.totalorder %s3871_s18, %s2963_s12  ;;  %p2967_p10 = scmp.lt.u32.totalorder %s2963_s12, %s3871_s18 }
 0xd25   :  { %p2969_p11 = pnand %p2967_p10, %p2964_p9 }
 0xd27   :  { %2972 = shalt.err (!%p2969_p11)
}
 0xd28   :  { %2339 = dma.vmem_to_hbm [thread:$0]  %s2337_s20, 32, %s3871_s18, [#allocation10]  }
 0xd29   :  { %2977 = dma.done.wait [#allocation4], 32  }
 0xd2a   :  { %2978 = vsyncadd [#allocation4], 4294967264 }
 0xd2b   :  { %2979 = dma.done.wait [#allocation10], 32  }
 0xd2c   :  { %2980 = vsyncadd [#allocation10], 4294967264 }
 0xd2d   :  { %2346 = vsyncpa [#allocation4], 1 }
 0xd2e   :  { %2347 = vsyncpa [#allocation10], 1 }
 0xd2f   :  { %2348 = vsyncpa [#allocation5], 1 }
 0xd30   :  { %2349 = vsyncpa [#allocation7], 1 }

</bundles_post_ra>
